<compile_context>
chip_gen: v6e
topology: v6e:2x2x1
jax: 0.10.0
libtpu: 0.0.40
codegen_flags: <defaults>
</compile_context>

<pallas_src>
import math

import jax
import jax.numpy as jnp
import numpy as np
from jax.experimental import pallas as pl
from jax.experimental.pallas import tpu as pltpu

# ---------------- small, deterministic model hyper-parameters ----------------
BATCH = 2
N_CHANNEL = 4
SEQ_LEN = 32                      # raw time-series length
PATCH_SIZE = 4
NUM_PATCHES = SEQ_LEN // PATCH_SIZE          # 8
SEQ_TOK = NUM_PATCHES + 1                    # 9 tokens (cls + patches)
PATCH_DIM = N_CHANNEL * PATCH_SIZE           # 16

D_MODEL = 32
N_HEAD = 4
HEAD_DIM = D_MODEL // N_HEAD                 # 8
EXPANSION = 4
D_FF = D_MODEL * EXPANSION                   # 128
NUM_LAYER = 2
MAX_PATCH_NUMS = 16
LN_EPS = 1e-5

BS = BATCH * SEQ_TOK                         # 18 rows (batch folded into matmul rows)
PK = N_HEAD * BS                             # 72 packed (head, batch, seq) attention axis
INV_SQRT2 = 1.0 / math.sqrt(2.0)


# =============================== kernel ======================================
def _vit_kernel(xp_ref,                       # (B*P, PATCH_DIM) patched input
                emb_wt_ref,                   # (PATCH_DIM, D)   embedding weight^T
                selp_ref,                     # (BS, B*P)        patch -> token scatter
                addc_ref,                     # (BS, D)          cls + pos additive constant
                ln1_w_ref, ln1_b_ref,         # (L, 1, D)
                in_wt_ref, in_b_ref,          # (L, D, 3D), (L, 1, 3D)  (Q pre-scaled)
                out_wt_ref, out_b_ref,        # (L, D, D), (L, 1, D)
                ln2_w_ref, ln2_b_ref,         # (L, 1, D)
                w1t_ref, b1_ref,              # (L, D, F), (L, 1, F)
                w2t_ref, b2_ref,              # (L, F, D), (L, 1, D)
                lnf_w_ref, lnf_b_ref,         # (1, D) final LayerNorm
                head_mask_ref,                # (PK, D)  0/1 constant
                rep_ref,                      # (PK, BS) 0/1 head-replication matrix
                valid_ref,                    # (BS, PK) 0/1 same-batch mask
                ones_blk_ref,                 # (PK, PK) 0/1 per-(head,batch)-block ones
                selcls_ref,                   # (B, BS)  cls-row selector
                o_ref):                       # (B, D)
    f32 = jnp.float32

    # ---- patch embedding + cls concat + positional embedding (fused as matmuls) ----
    emb = jnp.dot(xp_ref[...], emb_wt_ref[...], preferred_element_type=f32)   # (B*P, D)
    x = jnp.dot(selp_ref[...], emb, preferred_element_type=f32) + addc_ref[...]  # (BS, D)

    # constant selectors, loaded once (hoisted out of the layer loop)
    head_mask = head_mask_ref[...]
    rep = rep_ref[...]
    valid = valid_ref[...]
    inv_valid = 1.0 - valid
    ones_blk = ones_blk_ref[...]

    def layer_norm(v, w, b):
        mu = jnp.mean(v, axis=-1, keepdims=True)
        var = jnp.mean((v - mu) * (v - mu), axis=-1, keepdims=True)
        return (v - mu) * jax.lax.rsqrt(var + LN_EPS) * w + b

    for l in range(NUM_LAYER):                # tiny static unroll over layers
        # ---------------- LayerNorm 1 + QKV projection ----------------
        xn = layer_norm(x, ln1_w_ref[l], ln1_b_ref[l])
        qkv = jnp.dot(xn, in_wt_ref[l], preferred_element_type=f32) + in_b_ref[l]
        q = qkv[:, 0:D_MODEL]                 # already scaled by 1/sqrt(HEAD_DIM)
        k = qkv[:, D_MODEL:2 * D_MODEL]
        v = qkv[:, 2 * D_MODEL:3 * D_MODEL]

        # ---- fused multi-head attention via block-diagonal (head, batch) packing ----
        # packed axis j = h*BS + (b*S + s); k_bd[j, d] = k[j%BS, d] iff d//Hd == j//BS
        k_bd = jnp.dot(rep, k, preferred_element_type=f32) * head_mask        # (PK, D)
        v_bd = jnp.dot(rep, v, preferred_element_type=f32) * head_mask        # (PK, D)

        s = jax.lax.dot_general(q, k_bd, (((1,), (1,)), ((), ())),
                                preferred_element_type=f32)                   # (BS, PK)
        m = jnp.max(s, axis=-1, keepdims=True)       # global row max (shift-invariant)
        p = jnp.exp(s - m) * valid                   # zero cross-batch columns
        # per-(head,batch)-block softmax denominator via a block-ones matmul
        denom = jnp.dot(p, ones_blk, preferred_element_type=f32) + inv_valid
        p = p * pl.reciprocal(denom)                 # exact reciprocal (robustness)

        attn = jnp.dot(p, v_bd, preferred_element_type=f32)                   # (BS, D)
        attn = jnp.dot(attn, out_wt_ref[l], preferred_element_type=f32) + out_b_ref[l]
        # dropout: identity (inference)
        x = x + attn                                  # residual 1

        # ---------------- LayerNorm 2 + GELU MLP ----------------
        xn2 = layer_norm(x, ln2_w_ref[l], ln2_b_ref[l])
        h1 = jnp.dot(xn2, w1t_ref[l], preferred_element_type=f32) + b1_ref[l]
        g = 0.5 * h1 * (1.0 + jax.lax.erf(h1 * INV_SQRT2))   # exact-erf GELU
        h2 = jnp.dot(g, w2t_ref[l], preferred_element_type=f32) + b2_ref[l]
        x = x + h2                                    # residual 2

    # ---------------- final LayerNorm + cls-token readout ----------------
    xf = layer_norm(x, lnf_w_ref[...], lnf_b_ref[...])
    o_ref[...] = jnp.dot(selcls_ref[...], xf, preferred_element_type=f32)     # (B, D)


# ============================ one-time parameter prep =========================
def _build_constants():
    """Compile-time constant selector matrices (pure functions of the hyper-params)."""
    j = np.arange(PK)
    d = np.arange(D_MODEL)
    i = np.arange(BS)
    head_mask = ((j[:, None] // BS) == (d[None, :] // HEAD_DIM)).astype(np.float32)
    rep = ((j[:, None] % BS) == np.arange(BS)[None, :]).astype(np.float32)
    valid = ((i[:, None] // SEQ_TOK) == ((j[None, :] % BS) // SEQ_TOK)).astype(np.float32)
    ones_blk = ((j[:, None] // SEQ_TOK) == (j[None, :] // SEQ_TOK)).astype(np.float32)

    selp = np.zeros((BS, BATCH * NUM_PATCHES), np.float32)
    for b in range(BATCH):
        for pch in range(NUM_PATCHES):
            selp[b * SEQ_TOK + pch + 1, b * NUM_PATCHES + pch] = 1.0
    selcls = np.zeros((BATCH, BS), np.float32)
    for b in range(BATCH):
        selcls[b, b * SEQ_TOK] = 1.0
    return head_mask, rep, valid, ones_blk, selp, selcls


def prepare_params(raw):
    """One-time prep (at parameter-load time): transposes, scale folding, stacking,
    and constant masks.  Nothing here runs in the per-call forward path."""
    cls, emb_w, pos, layers, lnf_w, lnf_b = raw
    scale = 1.0 / math.sqrt(HEAD_DIM)

    head_mask, rep, valid, ones_blk, selp, selcls = (jnp.asarray(c)
                                                     for c in _build_constants())

    emb_wt = jnp.transpose(emb_w)                              # (PATCH_DIM, D)
    addc = pos[0, :SEQ_TOK, :]                                 # (S, D) positional emb
    addc = addc.at[0].add(cls[0, 0])                           # fold cls token into row 0
    addc = jnp.tile(addc, (BATCH, 1))                          # (BS, D)

    ln1_w, ln1_b, in_wt, in_b = [], [], [], []
    out_wt, out_b, ln2_w, ln2_b = [], [], [], []
    w1t, b1, w2t, b2 = [], [], [], []
    for (l1w, l1b, inw, inb, outw, outb, l2w, l2b, w1, bb1, w2, bb2) in layers:
        ln1_w.append(l1w.reshape(1, D_MODEL))
        ln1_b.append(l1b.reshape(1, D_MODEL))
        in_wt.append(jnp.transpose(inw).at[:, :D_MODEL].multiply(scale))   # fold attn scale into Q
        in_b.append(inb.reshape(1, 3 * D_MODEL).at[:, :D_MODEL].multiply(scale))
        out_wt.append(jnp.transpose(outw))
        out_b.append(outb.reshape(1, D_MODEL))
        ln2_w.append(l2w.reshape(1, D_MODEL))
        ln2_b.append(l2b.reshape(1, D_MODEL))
        w1t.append(jnp.transpose(w1))
        b1.append(bb1.reshape(1, D_FF))
        w2t.append(jnp.transpose(w2))
        b2.append(bb2.reshape(1, D_MODEL))
    stk = lambda xs: jnp.stack(xs, axis=0)

    return (emb_wt, selp, addc,
            stk(ln1_w), stk(ln1_b), stk(in_wt), stk(in_b),
            stk(out_wt), stk(out_b), stk(ln2_w), stk(ln2_b),
            stk(w1t), stk(b1), stk(w2t), stk(b2),
            lnf_w.reshape(1, D_MODEL), lnf_b.reshape(1, D_MODEL),
            head_mask, rep, valid, ones_blk, selcls)


# ================================ forward =====================================
def vit_forward(x, prep):
    B, C, T = x.shape
    assert B == BATCH and C == N_CHANNEL and T == SEQ_LEN
    P = T // PATCH_SIZE
    # _pickup_patching (x-dependent, cheap reshapes/transpose in the wrapper)
    xp = x.reshape(B, C, P, PATCH_SIZE).transpose(0, 2, 1, 3).reshape(B * P, C * PATCH_SIZE)

    vmem = pl.BlockSpec(memory_space=pltpu.MemorySpace.VMEM)
    args = (xp,) + prep
    return pl.pallas_call(
        _vit_kernel,
        out_shape=jax.ShapeDtypeStruct((B, D_MODEL), jnp.float32),
        in_specs=[vmem] * len(args),
        out_specs=vmem,
    )(*args)


vit_forward_jit = jax.jit(vit_forward)


# ======================== pure-JAX reference (correctness) ====================
def _reference(x, raw):
    cls, emb_w, pos, layers, lnf_w, lnf_b = raw
    B, C, T = x.shape
    P = T // PATCH_SIZE
    xp = x.reshape(B, C, P, PATCH_SIZE).transpose(0, 2, 1, 3).reshape(B, P, C * PATCH_SIZE)
    h = jnp.einsum("bpe,de->bpd", xp, emb_w)                        # Linear (no bias)
    h = jnp.concatenate([jnp.broadcast_to(cls, (B, 1, D_MODEL)), h], axis=1)
    h = h + pos[:, :P + 1, :]

    def ln(v, w, b):
        mu = jnp.mean(v, -1, keepdims=True)
        var = jnp.mean((v - mu) ** 2, -1, keepdims=True)
        return (v - mu) * jax.lax.rsqrt(var + LN_EPS) * w + b

    def split_heads(t):
        return t.reshape(B, -1, N_HEAD, HEAD_DIM).transpose(0, 2, 1, 3)

    for (l1w, l1b, inw, inb, outw, outb, l2w, l2b, w1, bb1, w2, bb2) in layers:
        xn = ln(h, l1w, l1b)
        qkv = jnp.einsum("bsd,ed->bse", xn, inw) + inb
        q, k, v = jnp.split(qkv, 3, axis=-1)
        qh, kh, vh = split_heads(q), split_heads(k), split_heads(v)
        s = jnp.einsum("bhqd,bhkd->bhqk", qh, kh) / math.sqrt(HEAD_DIM)
        pattn = jax.nn.softmax(s, axis=-1)
        a = jnp.einsum("bhqk,bhkd->bhqd", pattn, vh).transpose(0, 2, 1, 3).reshape(B, -1, D_MODEL)
        a = jnp.einsum("bsd,ed->bse", a, outw) + outb
        h = h + a
        xn2 = ln(h, l2w, l2b)
        m1 = jnp.einsum("bsd,fd->bsf", xn2, w1) + bb1
        g = 0.5 * m1 * (1.0 + jax.lax.erf(m1 / math.sqrt(2.0)))
        m2 = jnp.einsum("bsf,df->bsd", g, w2) + bb2
        h = h + m2

    h = ln(h, lnf_w, lnf_b)
    return h[:, 0, :]                                               # pooling=False path


# =============================== initialization ===============================
def init_raw_params(key):
    ks = iter(jax.random.split(key, 3 + 8 * NUM_LAYER))

    def xavier(k, shape):
        fan_out, fan_in = shape
        bound = math.sqrt(6.0 / (fan_in + fan_out))
        return jax.random.uniform(k, shape, jnp.float32, -bound, bound)

    cls = 0.02 * jax.random.normal(next(ks), (1, 1, D_MODEL), jnp.float32)
    emb_w = xavier(next(ks), (D_MODEL, PATCH_DIM))
    pos = 0.02 * jax.random.normal(next(ks), (1, 1 + MAX_PATCH_NUMS, D_MODEL), jnp.float32)

    layers = []
    for _ in range(NUM_LAYER):
        ln1w = jnp.ones((D_MODEL,), jnp.float32)
        ln1b = jnp.zeros((D_MODEL,), jnp.float32)
        inw = xavier(next(ks), (3 * D_MODEL, D_MODEL))
        inb = 0.01 * jax.random.normal(next(ks), (3 * D_MODEL,), jnp.float32)
        outw = xavier(next(ks), (D_MODEL, D_MODEL))
        outb = 0.01 * jax.random.normal(next(ks), (D_MODEL,), jnp.float32)
        ln2w = jnp.ones((D_MODEL,), jnp.float32)
        ln2b = jnp.zeros((D_MODEL,), jnp.float32)
        w1 = xavier(next(ks), (D_FF, D_MODEL))
        b1 = 0.01 * jax.random.normal(next(ks), (D_FF,), jnp.float32)
        w2 = xavier(next(ks), (D_MODEL, D_FF))
        b2 = 0.01 * jax.random.normal(next(ks), (D_MODEL,), jnp.float32)
        layers.append((ln1w, ln1b, inw, inb, outw, outb, ln2w, ln2b, w1, b1, w2, b2))

    lnf_w = jnp.ones((D_MODEL,), jnp.float32)
    lnf_b = jnp.zeros((D_MODEL,), jnp.float32)
    return cls, emb_w, pos, layers, lnf_w, lnf_b


if __name__ == "__main__":
    key = jax.random.PRNGKey(0)
    k_x, k_p = jax.random.split(key)
    x = jax.random.normal(k_x, (BATCH, N_CHANNEL, SEQ_LEN), jnp.float32)

    raw = init_raw_params(k_p)
    prep = prepare_params(raw)          # one-time weight/mask prep (outside forward path)
    prep = jax.block_until_ready(prep)

    out = vit_forward_jit(x, prep)
    out = jax.block_until_ready(out)

    ref = _reference(x, raw)
    np.testing.assert_allclose(np.asarray(out), np.asarray(ref), atol=1e-3, rtol=1e-3)
    print("KERNEL_OK")
</pallas_src>

<mosaic_0001>
module attributes {stable_mosaic.version = 11 : i64} {
  func.func @_vit_kernel(%arg0: memref<16x16xf32, #tpu.memory_space<vmem>>, %arg1: memref<16x32xf32, #tpu.memory_space<vmem>>, %arg2: memref<18x16xf32, #tpu.memory_space<vmem>>, %arg3: memref<18x32xf32, #tpu.memory_space<vmem>>, %arg4: memref<2x1x32xf32, #tpu.memory_space<vmem>>, %arg5: memref<2x1x32xf32, #tpu.memory_space<vmem>>, %arg6: memref<2x32x96xf32, #tpu.memory_space<vmem>>, %arg7: memref<2x1x96xf32, #tpu.memory_space<vmem>>, %arg8: memref<2x32x32xf32, #tpu.memory_space<vmem>>, %arg9: memref<2x1x32xf32, #tpu.memory_space<vmem>>, %arg10: memref<2x1x32xf32, #tpu.memory_space<vmem>>, %arg11: memref<2x1x32xf32, #tpu.memory_space<vmem>>, %arg12: memref<2x32x128xf32, #tpu.memory_space<vmem>>, %arg13: memref<2x1x128xf32, #tpu.memory_space<vmem>>, %arg14: memref<2x128x32xf32, #tpu.memory_space<vmem>>, %arg15: memref<2x1x32xf32, #tpu.memory_space<vmem>>, %arg16: memref<1x32xf32, #tpu.memory_space<vmem>>, %arg17: memref<1x32xf32, #tpu.memory_space<vmem>>, %arg18: memref<72x32xf32, #tpu.memory_space<vmem>>, %arg19: memref<72x18xf32, #tpu.memory_space<vmem>>, %arg20: memref<18x72xf32, #tpu.memory_space<vmem>>, %arg21: memref<72x72xf32, #tpu.memory_space<vmem>>, %arg22: memref<2x18xf32, #tpu.memory_space<vmem>>, %arg23: memref<2x32xf32, #tpu.memory_space<vmem>>) attributes {dimension_semantics = [], scalar_prefetch = 0 : i64, scratch_operands = 0 : i64, tpu.core_type = #tpu.core_type<tc>} {
    %c0 = arith.constant 0 : index
    %c0_0 = arith.constant 0 : index
    %0 = vector.load %arg0[%c0, %c0_0] : memref<16x16xf32, #tpu.memory_space<vmem>>, vector<16x16xf32>
    %c0_1 = arith.constant 0 : index
    %c0_2 = arith.constant 0 : index
    %1 = vector.load %arg1[%c0_1, %c0_2] : memref<16x32xf32, #tpu.memory_space<vmem>>, vector<16x32xf32>
    %cst = arith.constant dense<0.000000e+00> : vector<16x32xf32>
    %2 = tpu.matmul %0, %1, %cst {dimension_numbers = #tpu.dot_dimension_numbers<[1], [0], [0], [1], [0, 0, 1, 1], [], []>} : vector<16x16xf32>, vector<16x32xf32>, vector<16x32xf32> -> vector<16x32xf32>
    %c0_3 = arith.constant 0 : index
    %c0_4 = arith.constant 0 : index
    %3 = vector.load %arg2[%c0_3, %c0_4] : memref<18x16xf32, #tpu.memory_space<vmem>>, vector<18x16xf32>
    %cst_5 = arith.constant dense<0.000000e+00> : vector<18x32xf32>
    %4 = tpu.matmul %3, %2, %cst_5 {dimension_numbers = #tpu.dot_dimension_numbers<[1], [0], [0], [1], [0, 0, 1, 1], [], []>} : vector<18x16xf32>, vector<16x32xf32>, vector<18x32xf32> -> vector<18x32xf32>
    %c0_6 = arith.constant 0 : index
    %c0_7 = arith.constant 0 : index
    %5 = vector.load %arg3[%c0_6, %c0_7] : memref<18x32xf32, #tpu.memory_space<vmem>>, vector<18x32xf32>
    %6 = arith.addf %4, %5 : vector<18x32xf32>
    %c0_8 = arith.constant 0 : index
    %c0_9 = arith.constant 0 : index
    %7 = vector.load %arg18[%c0_8, %c0_9] : memref<72x32xf32, #tpu.memory_space<vmem>>, vector<72x32xf32>
    %c0_10 = arith.constant 0 : index
    %c0_11 = arith.constant 0 : index
    %8 = vector.load %arg19[%c0_10, %c0_11] : memref<72x18xf32, #tpu.memory_space<vmem>>, vector<72x18xf32>
    %c0_12 = arith.constant 0 : index
    %c0_13 = arith.constant 0 : index
    %9 = vector.load %arg20[%c0_12, %c0_13] : memref<18x72xf32, #tpu.memory_space<vmem>>, vector<18x72xf32>
    %cst_14 = arith.constant 1.000000e+00 : f32
    %10 = vector.broadcast %cst_14 : f32 to vector<18x72xf32>
    %11 = arith.subf %10, %9 : vector<18x72xf32>
    %c0_15 = arith.constant 0 : index
    %c0_16 = arith.constant 0 : index
    %12 = vector.load %arg21[%c0_15, %c0_16] : memref<72x72xf32, #tpu.memory_space<vmem>>, vector<72x72xf32>
    %c0_17 = arith.constant 0 : index
    %c0_18 = arith.constant 0 : index
    %c0_19 = arith.constant 0 : index
    %13 = vector.load %arg4[%c0_17, %c0_18, %c0_19] : memref<2x1x32xf32, #tpu.memory_space<vmem>>, vector<1x1x32xf32>
    %14 = vector.shape_cast %13 : vector<1x1x32xf32> to vector<1x32xf32>
    %c0_20 = arith.constant 0 : index
    %c0_21 = arith.constant 0 : index
    %c0_22 = arith.constant 0 : index
    %15 = vector.load %arg5[%c0_20, %c0_21, %c0_22] : memref<2x1x32xf32, #tpu.memory_space<vmem>>, vector<1x1x32xf32>
    %16 = vector.shape_cast %15 : vector<1x1x32xf32> to vector<1x32xf32>
    %cst_23 = arith.constant dense<0.000000e+00> : vector<18xf32>
    %17 = vector.multi_reduction <add>, %6, %cst_23 [1] : vector<18x32xf32> to vector<18xf32>
    %18 = vector.shape_cast %17 : vector<18xf32> to vector<18x1xf32>
    %cst_24 = arith.constant 3.200000e+01 : f32
    %19 = vector.broadcast %cst_24 : f32 to vector<18x1xf32>
    %20 = arith.divf %18, %19 : vector<18x1xf32>
    %21 = vector.broadcast %20 : vector<18x1xf32> to vector<18x32xf32>
    %22 = arith.subf %6, %21 : vector<18x32xf32>
    %23 = vector.broadcast %20 : vector<18x1xf32> to vector<18x32xf32>
    %24 = arith.subf %6, %23 : vector<18x32xf32>
    %25 = arith.mulf %22, %24 : vector<18x32xf32>
    %cst_25 = arith.constant dense<0.000000e+00> : vector<18xf32>
    %26 = vector.multi_reduction <add>, %25, %cst_25 [1] : vector<18x32xf32> to vector<18xf32>
    %27 = vector.shape_cast %26 : vector<18xf32> to vector<18x1xf32>
    %cst_26 = arith.constant 3.200000e+01 : f32
    %28 = vector.broadcast %cst_26 : f32 to vector<18x1xf32>
    %29 = arith.divf %27, %28 : vector<18x1xf32>
    %30 = vector.broadcast %20 : vector<18x1xf32> to vector<18x32xf32>
    %31 = arith.subf %6, %30 : vector<18x32xf32>
    %cst_27 = arith.constant 9.99999974E-6 : f32
    %32 = vector.broadcast %cst_27 : f32 to vector<18x1xf32>
    %33 = arith.addf %29, %32 : vector<18x1xf32>
    %34 = math.rsqrt %33 : vector<18x1xf32>
    %35 = vector.broadcast %34 : vector<18x1xf32> to vector<18x32xf32>
    %36 = arith.mulf %31, %35 : vector<18x32xf32>
    %37 = vector.broadcast %14 : vector<1x32xf32> to vector<18x32xf32>
    %38 = arith.mulf %36, %37 : vector<18x32xf32>
    %39 = vector.broadcast %16 : vector<1x32xf32> to vector<18x32xf32>
    %40 = arith.addf %38, %39 : vector<18x32xf32>
    %c0_28 = arith.constant 0 : index
    %c0_29 = arith.constant 0 : index
    %c0_30 = arith.constant 0 : index
    %41 = vector.load %arg6[%c0_28, %c0_29, %c0_30] : memref<2x32x96xf32, #tpu.memory_space<vmem>>, vector<1x32x96xf32>
    %42 = vector.shape_cast %41 : vector<1x32x96xf32> to vector<32x96xf32>
    %cst_31 = arith.constant dense<0.000000e+00> : vector<18x96xf32>
    %43 = tpu.matmul %40, %42, %cst_31 {dimension_numbers = #tpu.dot_dimension_numbers<[1], [0], [0], [1], [0, 0, 1, 1], [], []>} : vector<18x32xf32>, vector<32x96xf32>, vector<18x96xf32> -> vector<18x96xf32>
    %c0_32 = arith.constant 0 : index
    %c0_33 = arith.constant 0 : index
    %c0_34 = arith.constant 0 : index
    %44 = vector.load %arg7[%c0_32, %c0_33, %c0_34] : memref<2x1x96xf32, #tpu.memory_space<vmem>>, vector<1x1x96xf32>
    %45 = vector.shape_cast %44 : vector<1x1x96xf32> to vector<1x96xf32>
    %46 = vector.broadcast %45 : vector<1x96xf32> to vector<18x96xf32>
    %47 = arith.addf %43, %46 : vector<18x96xf32>
    %48 = vector.extract_strided_slice %47 {offsets = [0, 0], sizes = [18, 32], strides = [1, 1]} : vector<18x96xf32> to vector<18x32xf32>
    %49 = vector.extract_strided_slice %47 {offsets = [0, 32], sizes = [18, 32], strides = [1, 1]} : vector<18x96xf32> to vector<18x32xf32>
    %50 = vector.extract_strided_slice %47 {offsets = [0, 64], sizes = [18, 32], strides = [1, 1]} : vector<18x96xf32> to vector<18x32xf32>
    %cst_35 = arith.constant dense<0.000000e+00> : vector<72x32xf32>
    %51 = tpu.matmul %8, %49, %cst_35 {dimension_numbers = #tpu.dot_dimension_numbers<[1], [0], [0], [1], [0, 0, 1, 1], [], []>} : vector<72x18xf32>, vector<18x32xf32>, vector<72x32xf32> -> vector<72x32xf32>
    %52 = arith.mulf %51, %7 : vector<72x32xf32>
    %cst_36 = arith.constant dense<0.000000e+00> : vector<72x32xf32>
    %53 = tpu.matmul %8, %50, %cst_36 {dimension_numbers = #tpu.dot_dimension_numbers<[1], [0], [0], [1], [0, 0, 1, 1], [], []>} : vector<72x18xf32>, vector<18x32xf32>, vector<72x32xf32> -> vector<72x32xf32>
    %54 = arith.mulf %53, %7 : vector<72x32xf32>
    %cst_37 = arith.constant dense<0.000000e+00> : vector<18x72xf32>
    %55 = tpu.matmul %48, %52, %cst_37 {dimension_numbers = #tpu.dot_dimension_numbers<[1], [1], [0], [0], [0, 0, 1, 0], [], []>} : vector<18x32xf32>, vector<72x32xf32>, vector<18x72xf32> -> vector<18x72xf32>
    %cst_38 = arith.constant dense<0xFF800000> : vector<18xf32>
    %56 = vector.multi_reduction <maximumf>, %55, %cst_38 [1] : vector<18x72xf32> to vector<18xf32>
    %57 = vector.shape_cast %56 : vector<18xf32> to vector<18x1xf32>
    %58 = vector.broadcast %57 : vector<18x1xf32> to vector<18x72xf32>
    %59 = arith.subf %55, %58 : vector<18x72xf32>
    %60 = math.exp %59 : vector<18x72xf32>
    %61 = arith.mulf %60, %9 : vector<18x72xf32>
    %cst_39 = arith.constant dense<0.000000e+00> : vector<18x72xf32>
    %62 = tpu.matmul %61, %12, %cst_39 {dimension_numbers = #tpu.dot_dimension_numbers<[1], [0], [0], [1], [0, 0, 1, 1], [], []>} : vector<18x72xf32>, vector<72x72xf32>, vector<18x72xf32> -> vector<18x72xf32>
    %63 = arith.addf %62, %11 : vector<18x72xf32>
    %64 = tpu.reciprocal %63 : vector<18x72xf32> -> vector<18x72xf32>
    %65 = arith.mulf %61, %64 : vector<18x72xf32>
    %cst_40 = arith.constant dense<0.000000e+00> : vector<18x32xf32>
    %66 = tpu.matmul %65, %54, %cst_40 {dimension_numbers = #tpu.dot_dimension_numbers<[1], [0], [0], [1], [0, 0, 1, 1], [], []>} : vector<18x72xf32>, vector<72x32xf32>, vector<18x32xf32> -> vector<18x32xf32>
    %c0_41 = arith.constant 0 : index
    %c0_42 = arith.constant 0 : index
    %c0_43 = arith.constant 0 : index
    %67 = vector.load %arg8[%c0_41, %c0_42, %c0_43] : memref<2x32x32xf32, #tpu.memory_space<vmem>>, vector<1x32x32xf32>
    %68 = vector.shape_cast %67 : vector<1x32x32xf32> to vector<32x32xf32>
    %cst_44 = arith.constant dense<0.000000e+00> : vector<18x32xf32>
    %69 = tpu.matmul %66, %68, %cst_44 {dimension_numbers = #tpu.dot_dimension_numbers<[1], [0], [0], [1], [0, 0, 1, 1], [], []>} : vector<18x32xf32>, vector<32x32xf32>, vector<18x32xf32> -> vector<18x32xf32>
    %c0_45 = arith.constant 0 : index
    %c0_46 = arith.constant 0 : index
    %c0_47 = arith.constant 0 : index
    %70 = vector.load %arg9[%c0_45, %c0_46, %c0_47] : memref<2x1x32xf32, #tpu.memory_space<vmem>>, vector<1x1x32xf32>
    %71 = vector.shape_cast %70 : vector<1x1x32xf32> to vector<1x32xf32>
    %72 = vector.broadcast %71 : vector<1x32xf32> to vector<18x32xf32>
    %73 = arith.addf %69, %72 : vector<18x32xf32>
    %74 = arith.addf %6, %73 : vector<18x32xf32>
    %c0_48 = arith.constant 0 : index
    %c0_49 = arith.constant 0 : index
    %c0_50 = arith.constant 0 : index
    %75 = vector.load %arg10[%c0_48, %c0_49, %c0_50] : memref<2x1x32xf32, #tpu.memory_space<vmem>>, vector<1x1x32xf32>
    %76 = vector.shape_cast %75 : vector<1x1x32xf32> to vector<1x32xf32>
    %c0_51 = arith.constant 0 : index
    %c0_52 = arith.constant 0 : index
    %c0_53 = arith.constant 0 : index
    %77 = vector.load %arg11[%c0_51, %c0_52, %c0_53] : memref<2x1x32xf32, #tpu.memory_space<vmem>>, vector<1x1x32xf32>
    %78 = vector.shape_cast %77 : vector<1x1x32xf32> to vector<1x32xf32>
    %cst_54 = arith.constant dense<0.000000e+00> : vector<18xf32>
    %79 = vector.multi_reduction <add>, %74, %cst_54 [1] : vector<18x32xf32> to vector<18xf32>
    %80 = vector.shape_cast %79 : vector<18xf32> to vector<18x1xf32>
    %cst_55 = arith.constant 3.200000e+01 : f32
    %81 = vector.broadcast %cst_55 : f32 to vector<18x1xf32>
    %82 = arith.divf %80, %81 : vector<18x1xf32>
    %83 = vector.broadcast %82 : vector<18x1xf32> to vector<18x32xf32>
    %84 = arith.subf %74, %83 : vector<18x32xf32>
    %85 = vector.broadcast %82 : vector<18x1xf32> to vector<18x32xf32>
    %86 = arith.subf %74, %85 : vector<18x32xf32>
    %87 = arith.mulf %84, %86 : vector<18x32xf32>
    %cst_56 = arith.constant dense<0.000000e+00> : vector<18xf32>
    %88 = vector.multi_reduction <add>, %87, %cst_56 [1] : vector<18x32xf32> to vector<18xf32>
    %89 = vector.shape_cast %88 : vector<18xf32> to vector<18x1xf32>
    %cst_57 = arith.constant 3.200000e+01 : f32
    %90 = vector.broadcast %cst_57 : f32 to vector<18x1xf32>
    %91 = arith.divf %89, %90 : vector<18x1xf32>
    %92 = vector.broadcast %82 : vector<18x1xf32> to vector<18x32xf32>
    %93 = arith.subf %74, %92 : vector<18x32xf32>
    %cst_58 = arith.constant 9.99999974E-6 : f32
    %94 = vector.broadcast %cst_58 : f32 to vector<18x1xf32>
    %95 = arith.addf %91, %94 : vector<18x1xf32>
    %96 = math.rsqrt %95 : vector<18x1xf32>
    %97 = vector.broadcast %96 : vector<18x1xf32> to vector<18x32xf32>
    %98 = arith.mulf %93, %97 : vector<18x32xf32>
    %99 = vector.broadcast %76 : vector<1x32xf32> to vector<18x32xf32>
    %100 = arith.mulf %98, %99 : vector<18x32xf32>
    %101 = vector.broadcast %78 : vector<1x32xf32> to vector<18x32xf32>
    %102 = arith.addf %100, %101 : vector<18x32xf32>
    %c0_59 = arith.constant 0 : index
    %c0_60 = arith.constant 0 : index
    %c0_61 = arith.constant 0 : index
    %103 = vector.load %arg12[%c0_59, %c0_60, %c0_61] : memref<2x32x128xf32, #tpu.memory_space<vmem>>, vector<1x32x128xf32>
    %104 = vector.shape_cast %103 : vector<1x32x128xf32> to vector<32x128xf32>
    %cst_62 = arith.constant dense<0.000000e+00> : vector<18x128xf32>
    %105 = tpu.matmul %102, %104, %cst_62 {dimension_numbers = #tpu.dot_dimension_numbers<[1], [0], [0], [1], [0, 0, 1, 1], [], []>} : vector<18x32xf32>, vector<32x128xf32>, vector<18x128xf32> -> vector<18x128xf32>
    %c0_63 = arith.constant 0 : index
    %c0_64 = arith.constant 0 : index
    %c0_65 = arith.constant 0 : index
    %106 = vector.load %arg13[%c0_63, %c0_64, %c0_65] : memref<2x1x128xf32, #tpu.memory_space<vmem>>, vector<1x1x128xf32>
    %107 = vector.shape_cast %106 : vector<1x1x128xf32> to vector<1x128xf32>
    %108 = vector.broadcast %107 : vector<1x128xf32> to vector<18x128xf32>
    %109 = arith.addf %105, %108 : vector<18x128xf32>
    %cst_66 = arith.constant 5.000000e-01 : f32
    %110 = vector.broadcast %cst_66 : f32 to vector<18x128xf32>
    %111 = arith.mulf %110, %109 : vector<18x128xf32>
    %cst_67 = arith.constant 0.707106769 : f32
    %112 = vector.broadcast %cst_67 : f32 to vector<18x128xf32>
    %113 = arith.mulf %109, %112 : vector<18x128xf32>
    %114 = math.erf %113 : vector<18x128xf32>
    %cst_68 = arith.constant 1.000000e+00 : f32
    %115 = vector.broadcast %cst_68 : f32 to vector<18x128xf32>
    %116 = arith.addf %115, %114 : vector<18x128xf32>
    %117 = arith.mulf %111, %116 : vector<18x128xf32>
    %c0_69 = arith.constant 0 : index
    %c0_70 = arith.constant 0 : index
    %c0_71 = arith.constant 0 : index
    %118 = vector.load %arg14[%c0_69, %c0_70, %c0_71] : memref<2x128x32xf32, #tpu.memory_space<vmem>>, vector<1x128x32xf32>
    %119 = vector.shape_cast %118 : vector<1x128x32xf32> to vector<128x32xf32>
    %cst_72 = arith.constant dense<0.000000e+00> : vector<18x32xf32>
    %120 = tpu.matmul %117, %119, %cst_72 {dimension_numbers = #tpu.dot_dimension_numbers<[1], [0], [0], [1], [0, 0, 1, 1], [], []>} : vector<18x128xf32>, vector<128x32xf32>, vector<18x32xf32> -> vector<18x32xf32>
    %c0_73 = arith.constant 0 : index
    %c0_74 = arith.constant 0 : index
    %c0_75 = arith.constant 0 : index
    %121 = vector.load %arg15[%c0_73, %c0_74, %c0_75] : memref<2x1x32xf32, #tpu.memory_space<vmem>>, vector<1x1x32xf32>
    %122 = vector.shape_cast %121 : vector<1x1x32xf32> to vector<1x32xf32>
    %123 = vector.broadcast %122 : vector<1x32xf32> to vector<18x32xf32>
    %124 = arith.addf %120, %123 : vector<18x32xf32>
    %125 = arith.addf %74, %124 : vector<18x32xf32>
    %c1 = arith.constant 1 : index
    %c0_76 = arith.constant 0 : index
    %c0_77 = arith.constant 0 : index
    %126 = vector.load %arg4[%c1, %c0_76, %c0_77] : memref<2x1x32xf32, #tpu.memory_space<vmem>>, vector<1x1x32xf32>
    %127 = vector.shape_cast %126 : vector<1x1x32xf32> to vector<1x32xf32>
    %c1_78 = arith.constant 1 : index
    %c0_79 = arith.constant 0 : index
    %c0_80 = arith.constant 0 : index
    %128 = vector.load %arg5[%c1_78, %c0_79, %c0_80] : memref<2x1x32xf32, #tpu.memory_space<vmem>>, vector<1x1x32xf32>
    %129 = vector.shape_cast %128 : vector<1x1x32xf32> to vector<1x32xf32>
    %cst_81 = arith.constant dense<0.000000e+00> : vector<18xf32>
    %130 = vector.multi_reduction <add>, %125, %cst_81 [1] : vector<18x32xf32> to vector<18xf32>
    %131 = vector.shape_cast %130 : vector<18xf32> to vector<18x1xf32>
    %cst_82 = arith.constant 3.200000e+01 : f32
    %132 = vector.broadcast %cst_82 : f32 to vector<18x1xf32>
    %133 = arith.divf %131, %132 : vector<18x1xf32>
    %134 = vector.broadcast %133 : vector<18x1xf32> to vector<18x32xf32>
    %135 = arith.subf %125, %134 : vector<18x32xf32>
    %136 = vector.broadcast %133 : vector<18x1xf32> to vector<18x32xf32>
    %137 = arith.subf %125, %136 : vector<18x32xf32>
    %138 = arith.mulf %135, %137 : vector<18x32xf32>
    %cst_83 = arith.constant dense<0.000000e+00> : vector<18xf32>
    %139 = vector.multi_reduction <add>, %138, %cst_83 [1] : vector<18x32xf32> to vector<18xf32>
    %140 = vector.shape_cast %139 : vector<18xf32> to vector<18x1xf32>
    %cst_84 = arith.constant 3.200000e+01 : f32
    %141 = vector.broadcast %cst_84 : f32 to vector<18x1xf32>
    %142 = arith.divf %140, %141 : vector<18x1xf32>
    %143 = vector.broadcast %133 : vector<18x1xf32> to vector<18x32xf32>
    %144 = arith.subf %125, %143 : vector<18x32xf32>
    %cst_85 = arith.constant 9.99999974E-6 : f32
    %145 = vector.broadcast %cst_85 : f32 to vector<18x1xf32>
    %146 = arith.addf %142, %145 : vector<18x1xf32>
    %147 = math.rsqrt %146 : vector<18x1xf32>
    %148 = vector.broadcast %147 : vector<18x1xf32> to vector<18x32xf32>
    %149 = arith.mulf %144, %148 : vector<18x32xf32>
    %150 = vector.broadcast %127 : vector<1x32xf32> to vector<18x32xf32>
    %151 = arith.mulf %149, %150 : vector<18x32xf32>
    %152 = vector.broadcast %129 : vector<1x32xf32> to vector<18x32xf32>
    %153 = arith.addf %151, %152 : vector<18x32xf32>
    %c1_86 = arith.constant 1 : index
    %c0_87 = arith.constant 0 : index
    %c0_88 = arith.constant 0 : index
    %154 = vector.load %arg6[%c1_86, %c0_87, %c0_88] : memref<2x32x96xf32, #tpu.memory_space<vmem>>, vector<1x32x96xf32>
    %155 = vector.shape_cast %154 : vector<1x32x96xf32> to vector<32x96xf32>
    %cst_89 = arith.constant dense<0.000000e+00> : vector<18x96xf32>
    %156 = tpu.matmul %153, %155, %cst_89 {dimension_numbers = #tpu.dot_dimension_numbers<[1], [0], [0], [1], [0, 0, 1, 1], [], []>} : vector<18x32xf32>, vector<32x96xf32>, vector<18x96xf32> -> vector<18x96xf32>
    %c1_90 = arith.constant 1 : index
    %c0_91 = arith.constant 0 : index
    %c0_92 = arith.constant 0 : index
    %157 = vector.load %arg7[%c1_90, %c0_91, %c0_92] : memref<2x1x96xf32, #tpu.memory_space<vmem>>, vector<1x1x96xf32>
    %158 = vector.shape_cast %157 : vector<1x1x96xf32> to vector<1x96xf32>
    %159 = vector.broadcast %158 : vector<1x96xf32> to vector<18x96xf32>
    %160 = arith.addf %156, %159 : vector<18x96xf32>
    %161 = vector.extract_strided_slice %160 {offsets = [0, 0], sizes = [18, 32], strides = [1, 1]} : vector<18x96xf32> to vector<18x32xf32>
    %162 = vector.extract_strided_slice %160 {offsets = [0, 32], sizes = [18, 32], strides = [1, 1]} : vector<18x96xf32> to vector<18x32xf32>
    %163 = vector.extract_strided_slice %160 {offsets = [0, 64], sizes = [18, 32], strides = [1, 1]} : vector<18x96xf32> to vector<18x32xf32>
    %cst_93 = arith.constant dense<0.000000e+00> : vector<72x32xf32>
    %164 = tpu.matmul %8, %162, %cst_93 {dimension_numbers = #tpu.dot_dimension_numbers<[1], [0], [0], [1], [0, 0, 1, 1], [], []>} : vector<72x18xf32>, vector<18x32xf32>, vector<72x32xf32> -> vector<72x32xf32>
    %165 = arith.mulf %164, %7 : vector<72x32xf32>
    %cst_94 = arith.constant dense<0.000000e+00> : vector<72x32xf32>
    %166 = tpu.matmul %8, %163, %cst_94 {dimension_numbers = #tpu.dot_dimension_numbers<[1], [0], [0], [1], [0, 0, 1, 1], [], []>} : vector<72x18xf32>, vector<18x32xf32>, vector<72x32xf32> -> vector<72x32xf32>
    %167 = arith.mulf %166, %7 : vector<72x32xf32>
    %cst_95 = arith.constant dense<0.000000e+00> : vector<18x72xf32>
    %168 = tpu.matmul %161, %165, %cst_95 {dimension_numbers = #tpu.dot_dimension_numbers<[1], [1], [0], [0], [0, 0, 1, 0], [], []>} : vector<18x32xf32>, vector<72x32xf32>, vector<18x72xf32> -> vector<18x72xf32>
    %cst_96 = arith.constant dense<0xFF800000> : vector<18xf32>
    %169 = vector.multi_reduction <maximumf>, %168, %cst_96 [1] : vector<18x72xf32> to vector<18xf32>
    %170 = vector.shape_cast %169 : vector<18xf32> to vector<18x1xf32>
    %171 = vector.broadcast %170 : vector<18x1xf32> to vector<18x72xf32>
    %172 = arith.subf %168, %171 : vector<18x72xf32>
    %173 = math.exp %172 : vector<18x72xf32>
    %174 = arith.mulf %173, %9 : vector<18x72xf32>
    %cst_97 = arith.constant dense<0.000000e+00> : vector<18x72xf32>
    %175 = tpu.matmul %174, %12, %cst_97 {dimension_numbers = #tpu.dot_dimension_numbers<[1], [0], [0], [1], [0, 0, 1, 1], [], []>} : vector<18x72xf32>, vector<72x72xf32>, vector<18x72xf32> -> vector<18x72xf32>
    %176 = arith.addf %175, %11 : vector<18x72xf32>
    %177 = tpu.reciprocal %176 : vector<18x72xf32> -> vector<18x72xf32>
    %178 = arith.mulf %174, %177 : vector<18x72xf32>
    %cst_98 = arith.constant dense<0.000000e+00> : vector<18x32xf32>
    %179 = tpu.matmul %178, %167, %cst_98 {dimension_numbers = #tpu.dot_dimension_numbers<[1], [0], [0], [1], [0, 0, 1, 1], [], []>} : vector<18x72xf32>, vector<72x32xf32>, vector<18x32xf32> -> vector<18x32xf32>
    %c1_99 = arith.constant 1 : index
    %c0_100 = arith.constant 0 : index
    %c0_101 = arith.constant 0 : index
    %180 = vector.load %arg8[%c1_99, %c0_100, %c0_101] : memref<2x32x32xf32, #tpu.memory_space<vmem>>, vector<1x32x32xf32>
    %181 = vector.shape_cast %180 : vector<1x32x32xf32> to vector<32x32xf32>
    %cst_102 = arith.constant dense<0.000000e+00> : vector<18x32xf32>
    %182 = tpu.matmul %179, %181, %cst_102 {dimension_numbers = #tpu.dot_dimension_numbers<[1], [0], [0], [1], [0, 0, 1, 1], [], []>} : vector<18x32xf32>, vector<32x32xf32>, vector<18x32xf32> -> vector<18x32xf32>
    %c1_103 = arith.constant 1 : index
    %c0_104 = arith.constant 0 : index
    %c0_105 = arith.constant 0 : index
    %183 = vector.load %arg9[%c1_103, %c0_104, %c0_105] : memref<2x1x32xf32, #tpu.memory_space<vmem>>, vector<1x1x32xf32>
    %184 = vector.shape_cast %183 : vector<1x1x32xf32> to vector<1x32xf32>
    %185 = vector.broadcast %184 : vector<1x32xf32> to vector<18x32xf32>
    %186 = arith.addf %182, %185 : vector<18x32xf32>
    %187 = arith.addf %125, %186 : vector<18x32xf32>
    %c1_106 = arith.constant 1 : index
    %c0_107 = arith.constant 0 : index
    %c0_108 = arith.constant 0 : index
    %188 = vector.load %arg10[%c1_106, %c0_107, %c0_108] : memref<2x1x32xf32, #tpu.memory_space<vmem>>, vector<1x1x32xf32>
    %189 = vector.shape_cast %188 : vector<1x1x32xf32> to vector<1x32xf32>
    %c1_109 = arith.constant 1 : index
    %c0_110 = arith.constant 0 : index
    %c0_111 = arith.constant 0 : index
    %190 = vector.load %arg11[%c1_109, %c0_110, %c0_111] : memref<2x1x32xf32, #tpu.memory_space<vmem>>, vector<1x1x32xf32>
    %191 = vector.shape_cast %190 : vector<1x1x32xf32> to vector<1x32xf32>
    %cst_112 = arith.constant dense<0.000000e+00> : vector<18xf32>
    %192 = vector.multi_reduction <add>, %187, %cst_112 [1] : vector<18x32xf32> to vector<18xf32>
    %193 = vector.shape_cast %192 : vector<18xf32> to vector<18x1xf32>
    %cst_113 = arith.constant 3.200000e+01 : f32
    %194 = vector.broadcast %cst_113 : f32 to vector<18x1xf32>
    %195 = arith.divf %193, %194 : vector<18x1xf32>
    %196 = vector.broadcast %195 : vector<18x1xf32> to vector<18x32xf32>
    %197 = arith.subf %187, %196 : vector<18x32xf32>
    %198 = vector.broadcast %195 : vector<18x1xf32> to vector<18x32xf32>
    %199 = arith.subf %187, %198 : vector<18x32xf32>
    %200 = arith.mulf %197, %199 : vector<18x32xf32>
    %cst_114 = arith.constant dense<0.000000e+00> : vector<18xf32>
    %201 = vector.multi_reduction <add>, %200, %cst_114 [1] : vector<18x32xf32> to vector<18xf32>
    %202 = vector.shape_cast %201 : vector<18xf32> to vector<18x1xf32>
    %cst_115 = arith.constant 3.200000e+01 : f32
    %203 = vector.broadcast %cst_115 : f32 to vector<18x1xf32>
    %204 = arith.divf %202, %203 : vector<18x1xf32>
    %205 = vector.broadcast %195 : vector<18x1xf32> to vector<18x32xf32>
    %206 = arith.subf %187, %205 : vector<18x32xf32>
    %cst_116 = arith.constant 9.99999974E-6 : f32
    %207 = vector.broadcast %cst_116 : f32 to vector<18x1xf32>
    %208 = arith.addf %204, %207 : vector<18x1xf32>
    %209 = math.rsqrt %208 : vector<18x1xf32>
    %210 = vector.broadcast %209 : vector<18x1xf32> to vector<18x32xf32>
    %211 = arith.mulf %206, %210 : vector<18x32xf32>
    %212 = vector.broadcast %189 : vector<1x32xf32> to vector<18x32xf32>
    %213 = arith.mulf %211, %212 : vector<18x32xf32>
    %214 = vector.broadcast %191 : vector<1x32xf32> to vector<18x32xf32>
    %215 = arith.addf %213, %214 : vector<18x32xf32>
    %c1_117 = arith.constant 1 : index
    %c0_118 = arith.constant 0 : index
    %c0_119 = arith.constant 0 : index
    %216 = vector.load %arg12[%c1_117, %c0_118, %c0_119] : memref<2x32x128xf32, #tpu.memory_space<vmem>>, vector<1x32x128xf32>
    %217 = vector.shape_cast %216 : vector<1x32x128xf32> to vector<32x128xf32>
    %cst_120 = arith.constant dense<0.000000e+00> : vector<18x128xf32>
    %218 = tpu.matmul %215, %217, %cst_120 {dimension_numbers = #tpu.dot_dimension_numbers<[1], [0], [0], [1], [0, 0, 1, 1], [], []>} : vector<18x32xf32>, vector<32x128xf32>, vector<18x128xf32> -> vector<18x128xf32>
    %c1_121 = arith.constant 1 : index
    %c0_122 = arith.constant 0 : index
    %c0_123 = arith.constant 0 : index
    %219 = vector.load %arg13[%c1_121, %c0_122, %c0_123] : memref<2x1x128xf32, #tpu.memory_space<vmem>>, vector<1x1x128xf32>
    %220 = vector.shape_cast %219 : vector<1x1x128xf32> to vector<1x128xf32>
    %221 = vector.broadcast %220 : vector<1x128xf32> to vector<18x128xf32>
    %222 = arith.addf %218, %221 : vector<18x128xf32>
    %cst_124 = arith.constant 5.000000e-01 : f32
    %223 = vector.broadcast %cst_124 : f32 to vector<18x128xf32>
    %224 = arith.mulf %223, %222 : vector<18x128xf32>
    %cst_125 = arith.constant 0.707106769 : f32
    %225 = vector.broadcast %cst_125 : f32 to vector<18x128xf32>
    %226 = arith.mulf %222, %225 : vector<18x128xf32>
    %227 = math.erf %226 : vector<18x128xf32>
    %cst_126 = arith.constant 1.000000e+00 : f32
    %228 = vector.broadcast %cst_126 : f32 to vector<18x128xf32>
    %229 = arith.addf %228, %227 : vector<18x128xf32>
    %230 = arith.mulf %224, %229 : vector<18x128xf32>
    %c1_127 = arith.constant 1 : index
    %c0_128 = arith.constant 0 : index
    %c0_129 = arith.constant 0 : index
    %231 = vector.load %arg14[%c1_127, %c0_128, %c0_129] : memref<2x128x32xf32, #tpu.memory_space<vmem>>, vector<1x128x32xf32>
    %232 = vector.shape_cast %231 : vector<1x128x32xf32> to vector<128x32xf32>
    %cst_130 = arith.constant dense<0.000000e+00> : vector<18x32xf32>
    %233 = tpu.matmul %230, %232, %cst_130 {dimension_numbers = #tpu.dot_dimension_numbers<[1], [0], [0], [1], [0, 0, 1, 1], [], []>} : vector<18x128xf32>, vector<128x32xf32>, vector<18x32xf32> -> vector<18x32xf32>
    %c1_131 = arith.constant 1 : index
    %c0_132 = arith.constant 0 : index
    %c0_133 = arith.constant 0 : index
    %234 = vector.load %arg15[%c1_131, %c0_132, %c0_133] : memref<2x1x32xf32, #tpu.memory_space<vmem>>, vector<1x1x32xf32>
    %235 = vector.shape_cast %234 : vector<1x1x32xf32> to vector<1x32xf32>
    %236 = vector.broadcast %235 : vector<1x32xf32> to vector<18x32xf32>
    %237 = arith.addf %233, %236 : vector<18x32xf32>
    %238 = arith.addf %187, %237 : vector<18x32xf32>
    %c0_134 = arith.constant 0 : index
    %c0_135 = arith.constant 0 : index
    %239 = vector.load %arg16[%c0_134, %c0_135] : memref<1x32xf32, #tpu.memory_space<vmem>>, vector<1x32xf32>
    %c0_136 = arith.constant 0 : index
    %c0_137 = arith.constant 0 : index
    %240 = vector.load %arg17[%c0_136, %c0_137] : memref<1x32xf32, #tpu.memory_space<vmem>>, vector<1x32xf32>
    %cst_138 = arith.constant dense<0.000000e+00> : vector<18xf32>
    %241 = vector.multi_reduction <add>, %238, %cst_138 [1] : vector<18x32xf32> to vector<18xf32>
    %242 = vector.shape_cast %241 : vector<18xf32> to vector<18x1xf32>
    %cst_139 = arith.constant 3.200000e+01 : f32
    %243 = vector.broadcast %cst_139 : f32 to vector<18x1xf32>
    %244 = arith.divf %242, %243 : vector<18x1xf32>
    %245 = vector.broadcast %244 : vector<18x1xf32> to vector<18x32xf32>
    %246 = arith.subf %238, %245 : vector<18x32xf32>
    %247 = vector.broadcast %244 : vector<18x1xf32> to vector<18x32xf32>
    %248 = arith.subf %238, %247 : vector<18x32xf32>
    %249 = arith.mulf %246, %248 : vector<18x32xf32>
    %cst_140 = arith.constant dense<0.000000e+00> : vector<18xf32>
    %250 = vector.multi_reduction <add>, %249, %cst_140 [1] : vector<18x32xf32> to vector<18xf32>
    %251 = vector.shape_cast %250 : vector<18xf32> to vector<18x1xf32>
    %cst_141 = arith.constant 3.200000e+01 : f32
    %252 = vector.broadcast %cst_141 : f32 to vector<18x1xf32>
    %253 = arith.divf %251, %252 : vector<18x1xf32>
    %254 = vector.broadcast %244 : vector<18x1xf32> to vector<18x32xf32>
    %255 = arith.subf %238, %254 : vector<18x32xf32>
    %cst_142 = arith.constant 9.99999974E-6 : f32
    %256 = vector.broadcast %cst_142 : f32 to vector<18x1xf32>
    %257 = arith.addf %253, %256 : vector<18x1xf32>
    %258 = math.rsqrt %257 : vector<18x1xf32>
    %259 = vector.broadcast %258 : vector<18x1xf32> to vector<18x32xf32>
    %260 = arith.mulf %255, %259 : vector<18x32xf32>
    %261 = vector.broadcast %239 : vector<1x32xf32> to vector<18x32xf32>
    %262 = arith.mulf %260, %261 : vector<18x32xf32>
    %263 = vector.broadcast %240 : vector<1x32xf32> to vector<18x32xf32>
    %264 = arith.addf %262, %263 : vector<18x32xf32>
    %c0_143 = arith.constant 0 : index
    %c0_144 = arith.constant 0 : index
    %265 = vector.load %arg22[%c0_143, %c0_144] : memref<2x18xf32, #tpu.memory_space<vmem>>, vector<2x18xf32>
    %cst_145 = arith.constant dense<0.000000e+00> : vector<2x32xf32>
    %266 = tpu.matmul %265, %264, %cst_145 {dimension_numbers = #tpu.dot_dimension_numbers<[1], [0], [0], [1], [0, 0, 1, 1], [], []>} : vector<2x18xf32>, vector<18x32xf32>, vector<2x32xf32> -> vector<2x32xf32>
    %c0_146 = arith.constant 0 : index
    %c0_147 = arith.constant 0 : index
    %267 = vector.load %arg23[%c0_146, %c0_147] : memref<2x32xf32, #tpu.memory_space<vmem>>, vector<2x32xf32>
    tpu.vector_store %arg23[%c0_146, %c0_147], %266 {strides = array<i32>} : memref<2x32xf32, #tpu.memory_space<vmem>>, vector<2x32xf32>,
    return
  }
}

</mosaic_0001>

<bundles_post_ra>
// kernel: vit_forward.1
= control target key start
LH: loop header
LB: loop body
LE: loop exit
PB: predicated region body
PF: predicated region fallthrough
CT: control target
= control target key end

     0   :  { %s4922_s0 = inlined_call_operand.vmem [shape: f32[16,16], index: 0, kind: input, shape index: {}]   ;;  %s4923_s1 = inlined_call_operand.vmem [shape: f32[16,32], index: 1, kind: input, shape index: {}]   ;;  %s4924_s2 = inlined_call_operand.vmem [shape: f32[18,16], index: 2, kind: input, shape index: {}]   ;;  %s4925_s3 = inlined_call_operand.vmem [shape: f32[18,32], index: 3, kind: input, shape index: {}]   ;;  %s4926_s4 = inlined_call_operand.vmem [shape: f32[2,1,32], index: 4, kind: input, shape index: {}]   ;;  %s4927_s5 = inlined_call_operand.vmem [shape: f32[2,1,32], index: 5, kind: input, shape index: {}]   ;;  %s4928_s6 = inlined_call_operand.vmem [shape: f32[2,32,96], index: 6, kind: input, shape index: {}]   ;;  %s4929_s7 = inlined_call_operand.vmem [shape: f32[2,1,96], index: 7, kind: input, shape index: {}]   ;;  %s4930_s8 = inlined_call_operand.vmem [shape: f32[2,32,32], index: 8, kind: input, shape index: {}]   ;;  %s4931_s9 = inlined_call_operand.vmem [shape: f32[2,1,32], index: 9, kind: input, shape index: {}]   ;;  %s4932_s10 = inlined_call_operand.vmem [shape: f32[2,1,32], index: 10, kind: input, shape index: {}]   ;;  %s4933_s11 = inlined_call_operand.vmem [shape: f32[2,1,32], index: 11, kind: input, shape index: {}]   ;;  %s4934_s12 = inlined_call_operand.vmem [shape: f32[2,32,128], index: 12, kind: input, shape index: {}]   ;;  %s4935_s13 = inlined_call_operand.vmem [shape: f32[2,1,128], index: 13, kind: input, shape index: {}]   ;;  %s4936_s14 = inlined_call_operand.vmem [shape: f32[2,128,32], index: 14, kind: input, shape index: {}]   ;;  %s4937_s15 = inlined_call_operand.vmem [shape: f32[2,1,32], index: 15, kind: input, shape index: {}]   ;;  %s4938_s16 = inlined_call_operand.vmem [shape: f32[1,32], index: 16, kind: input, shape index: {}]   ;;  %s4939_s17 = inlined_call_operand.vmem [shape: f32[1,32], index: 17, kind: input, shape index: {}]   ;;  %s4940_s18 = inlined_call_operand.vmem [shape: f32[72,32], index: 18, kind: input, shape index: {}]   ;;  %s4941_s19 = inlined_call_operand.vmem [shape: f32[72,18], index: 19, kind: input, shape index: {}]   ;;  %s4942_s20 = inlined_call_operand.vmem [shape: f32[18,72], index: 20, kind: input, shape index: {}]   ;;  %s4943_s21 = inlined_call_operand.vmem [shape: f32[72,72], index: 21, kind: input, shape index: {}]   ;;  %s4944_s22 = inlined_call_operand.vmem [shape: f32[2,18], index: 22, kind: input, shape index: {}]   ;;  %s4945_s23 = inlined_call_operand.hbm [shape: f32[2,32], index: 23, kind: output, shape index: {}]  }
   0x1   :  { %4954 = sst [smem:[#allocation5_spill]] %s4922_s0 }
   0x2   :  { %4955 = sst [smem:[#allocation6_spill]] %s4923_s1 }
   0x3   :  { %4956 = sst [smem:[#allocation7_spill]] %s4924_s2 }
   0x4   :  { %4957 = sst [smem:[#allocation8_spill]] %s4925_s3 }
   0x5   :  { %4958 = sst [smem:[#allocation9_spill]] %s4926_s4 }
   0x6   :  { %4959 = sst [smem:[#allocation10_spill]] %s4927_s5 }
   0x7   :  { %4960 = sst [smem:[#allocation11_spill]] %s4928_s6 }
   0x8   :  { %4961 = sst [smem:[#allocation12_spill]] %s4929_s7 }
   0x9   :  { %s4962_s24 = sld [smem:[#allocation6_spill]]  ;;  %vm79_vm0 = vcmask 130048  }
   0xa   :  { %s4963_s2 = sld [smem:[#allocation5_spill]] }
   0xf   :  { %v78_v0 = vld [vmem:[%s4962_s24 + $0x8] sm:$0xff]  ;;  %v77_v1 = vld [vmem:[%s4962_s24] sm:$0xff] }
  0x10   :  { %v75_v2 = vld [vmem:[%s4963_s2] sm:$0xff]  ;;  %3096 = vmatprep.subr.mxu0 %v78_v0 }
  0x11   :  { %3100 = vmatprep.mubr.msk.f32.mxu0 %vm79_vm0, %v75_v2 }
  0x12   :  { %28 = vsyncpa [#allocation3], 0  ;;  %3097 = vmatpush3.msra.mxu0 %v78_v0  ;;  %v76_v3 = vld [vmem:[%s4963_s2 + $0x8] sm:$0xff]  ;;  %v3721_v4 = vmov 0.0   ;;  %vm3722_vm1 = vmmov 0   ;;  %s4964_s29 = sld [smem:[#allocation7_spill]] }
  0x13   :  { %3098 = vmatprep.subr.mxu0 %v77_v1  ;;  %3603 = vmatprep.subr.mxu1 %v3721_v4  ;;  %s4965_s5 = sld [smem:[#allocation8_spill]]  ;;  %vm291_vm2 = vcmask 261120   ;;  %vm298_vm3 = vcmask 254976   ;;  %s3723_s3 = smov 96   ;;  %vm490_vm4 = vcmask 1041408   ;;  %vm462_vm5 = vcmask 146432  }
  0x14   :  { %3099 = vmatpush3.msra.mxu0 %v77_v1  ;;  %3110 = vmatprep.mubr.msk.f32.mxu1 %vm3722_vm1, %v3721_v4  ;;  %s4966_s28 = sld [smem:[#allocation11_spill]]  ;;  %s3724_s0 = smov 64   ;;  %vm854_vm6 = vcmask 588800   ;;  %vm861_vm7 = vcmask 582656  }
  0x15   :  { %3101 = vmatmul.mubr.msk.f32.vlgmr.msra.gmra.mxu0 %vm79_vm0, %v76_v3  ;;  %3103 = vmatprep.subr.mxu0 %v3721_v4  ;;  %s4967_s1 = sld [smem:[#allocation9_spill]] }
  0x16   :  { %3107 = vmatprep.mubr.msk.f32.mxu0 %vm3722_vm1, %v3721_v4  ;;  %s4968_s6 = sld [smem:[#allocation10_spill]] }
  0x18   :  { %v161_v6 = vld [vmem:[%s4964_s29] sm:$0xff]  ;;  %v162_v7 = vld [vmem:[%s4964_s29 + $0x8] sm:$0xff]  ;;  %v163_v9 = vld [vmem:[%s4964_s29 + $0x10] sm:$0x3]  ;;  %s4969_s29 = sld [smem:[#allocation12_spill]] }
  0x19   :  { %v164_v10 = vld [vmem:[%s4965_s5] sm:$0xff]  ;;  %v165_v11 = vld [vmem:[%s4965_s5 + $0x8] sm:$0xff]  ;;  %v166_v18 = vld [vmem:[%s4965_s5 + $0x10] sm:$0x3] }
  0x1a   :  { %v354_v40 = vld [vmem:[%s4966_s28 + $0x18] sm:$0xff]  ;;  %v353_v41 = vld [vmem:[%s4966_s28 + $0x10] sm:$0xff]  ;;  %v352_v42 = vld [vmem:[%s4966_s28 + $0x8] sm:$0xff] }
  0x1b   :  { %v351_v43 = vld [vmem:[%s4966_s28] sm:$0xff] }
  0x1c   :  { %v2733_v54 = vld [vmem:[%s4967_s1] ss:$0 sm:$0xff] }
  0x1d   :  { %v2734_v56 = vld [vmem:[%s4968_s6] ss:$0 sm:$0xff] }
  0xd5   :  { %v3102_v5 = vpop.f32.mrf.mxu0 }
  0xd6   :  { %3104 = vmatpush3.msra.mxu0 %v3102_v5  ;;  %3605 = vmatpush3.msra.mxu1 %v3102_v5 }
  0xd7   :  { %v152_v8 = vpop.f32.mrf.mxu0  ;;  %3105 = vmatprep.subr.mxu0 %v3721_v4  ;;  %3604 = vmatprep.subr.mxu1 %v3721_v4 }
  0xd8   :  { %3106 = vmatpush3.msra.mxu0 %v152_v8  ;;  %3606 = vmatpush3.msra.mxu1 %v152_v8 }
  0xd9   :  { %3108 = vmatmul.mubr.msk.f32.vlgmr.msra.gmra.mxu0 %vm79_vm0, %v161_v6  ;;  %3111 = vmatmul.mubr.msk.f32.vlgmr.msra.gmra.mxu1 %vm79_vm0, %v162_v7  ;;  %v2735_v6 = vld [vmem:[%s4969_s29] ss:$0 sm:$0xff] }
  0xda   :  { %3113 = vmatprep.mubr.msk.f32.mxu1 %vm3722_vm1, %v3721_v4  ;;  %3116 = vmatprep.subr.mxu1 %v3721_v4 }
  0xdb   :  { %3166 = vmatprep.subr.mxu0 %v3721_v4  ;;  %3172 = vmatprep.mubr.msk.f32.mxu0 %vm3722_vm1, %v3721_v4 }
  0xdc   :  { %3117 = vmatpush3.msra.mxu1 %v354_v40 }
  0xdd   :  { %3114 = vmatmul.mubr.msk.f32.gmra.mxu1 %vm79_vm0, %v163_v9  ;;  %3118 = vmatprep.subr.mxu1 %v3721_v4 }
  0xde   :  { %3124 = vmatprep.mubr.msk.f32.mxu1 %vm3722_vm1, %v3721_v4  ;;  %3119 = vmatpush3.msra.mxu1 %v353_v41 }
  0xdf   :  { %3120 = vmatprep.subr.mxu1 %v3721_v4 }
  0xe0   :  { %3121 = vmatpush3.msra.mxu1 %v352_v42 }
  0xe1   :  { %3122 = vmatprep.subr.mxu1 %v3721_v4 }
  0xe2   :  { %3123 = vmatpush3.msra.mxu1 %v351_v43 }
  0xe3   :  { %3133 = vmatprep.subr.mxu1 %v3721_v4 }
 0x199   :  { %v242_v12 = vpop.f32.mrf.mxu0  ;;  %v247_v13 = vpop.f32.mrf.mxu1 }
 0x19a   :  { %v3894_v14 = vadd.f32 %v242_v12, %v164_v10  ;;  %v3896_v15 = vadd.f32 %v247_v13, %v165_v11 }
 0x19b   :  { %v3109_v16 = vpop.f32.mrf.mxu0  ;;  %v3112_v17 = vpop.f32.mrf.mxu1 }
 0x19c   :  { %v292_v19 = vsel %vm291_vm2, %v3894_v14, 0.0  ;;  %v295_v22 = vsel %vm291_vm2, %v3896_v15, 0.0 }
 0x19d   :  { %v252_v20 = vpop.f32.mrf.mxu1  ;;  %293 = vadd.xlane.f32.xlu0 %v292_v19  ;;  %v265_v19 = vld [vmem:[%s4941_s19] sm:$0xff] }
 0x19e   :  { %v3903_v21 = vadd.f32 %v252_v20, %v166_v18 }
 0x19f   :  { %v3115_v23 = vpop.f32.mrf.mxu1 }
 0x1a0   :  { %v299_v24 = vsel %vm298_vm3, %v3903_v21, 0.0 }
 0x1a1   :  { %300 = vadd.xlane.f32.xlu1 %v299_v24  ;;  %296 = vadd.xlane.f32.xlu0 %v295_v22  ;;  %v266_v22 = vld [vmem:[%s4941_s19 + $0x8] sm:$0xff] }
 0x226   :  { %v294_v25 = vpop.xlane.xlu0 %293 }
 0x227   :  { %v303_v26 = vmul.f32 0.03125, %v294_v25  ;;  %v267_v25 = vld [vmem:[%s4941_s19 + $0x10] sm:$0xff] }
 0x229   :  { %v306_v27 = vsub.f32 %v3894_v14, %v303_v26  ;;  %v268_v26 = vld [vmem:[%s4941_s19 + $0x18] sm:$0xff] }
 0x22a   :  { %v301_v28 = vpop.xlane.xlu1 %300  ;;  %v297_v29 = vpop.xlane.xlu0 %296 }
 0x22b   :  { %v305_v30 = vmul.f32 0.03125, %v301_v28  ;;  %v304_v31 = vmul.f32 0.03125, %v297_v29  ;;  %v309_v32 = vmul.f32 %v306_v27, %v306_v27  ;;  %v270_v28 = vld [vmem:[%s4941_s19 + $0x28] sm:$0xff]  ;;  %v271_v29 = vld [vmem:[%s4941_s19 + $0x30] sm:$0xff] }
 0x22d   :  { %v308_v33 = vsub.f32 %v3903_v21, %v305_v30  ;;  %v307_v34 = vsub.f32 %v3896_v15, %v304_v31  ;;  %v312_v35 = vsel %vm291_vm2, %v309_v32, 0.0  ;;  %v272_v30 = vld [vmem:[%s4941_s19 + $0x38] sm:$0xff]  ;;  %v273_v31 = vld [vmem:[%s4941_s19 + $0x40] sm:$0xff] }
 0x22e   :  { %313 = vadd.xlane.f32.xlu1 %v312_v35 }
 0x22f   :  { %v311_v36 = vmul.f32 %v308_v33, %v308_v33  ;;  %v310_v37 = vmul.f32 %v307_v34, %v307_v34 }
 0x231   :  { %v318_v38 = vsel %vm298_vm3, %v311_v36, 0.0  ;;  %v315_v39 = vsel %vm291_vm2, %v310_v37, 0.0 }
 0x232   :  { %319 = vadd.xlane.f32.xlu1 %v318_v38  ;;  %316 = vadd.xlane.f32.xlu0 %v315_v39 }
 0x2b7   :  { %v314_v44 = vpop.xlane.xlu1 %313 }
 0x2b8   :  { %v321_v45 = vmul.f32 0.03125, %v314_v44 }
 0x2ba   :  { %v324_v46 = vadd.f32 1e-05, %v321_v45 }
 0x2bb   :  { %v320_v47 = vpop.xlane.xlu1 %319  ;;  %v317_v48 = vpop.xlane.xlu0 %316 }
 0x2bc   :  { %3612 = vrsqrt.f32 %v324_v46  ;;  %v323_v49 = vmul.f32 0.03125, %v320_v47  ;;  %v322_v50 = vmul.f32 0.03125, %v317_v48  ;;  %v4059_v48 = vld [vmem:[%s4940_s18 + $0x40] sm:$0xff] }
 0x2be   :  { %v326_v51 = vadd.f32 1e-05, %v323_v49  ;;  %v325_v52 = vadd.f32 1e-05, %v322_v50 }
 0x2c0   :  { %3614 = vrsqrt.f32 %v326_v51  ;;  %v4065_v51 = vld [vmem:[%s4940_s18 + $0x38] sm:$0xff] }
 0x2c1   :  { %3616 = vrsqrt.f32 %v325_v52 }
 0x2c9   :  { %v3613_v53 = vpop.eup %3612 }
 0x2ca   :  { %v330_v55 = vmul.f32 %v3613_v53, %v306_v27  ;;  %v269_v27 = vld [vmem:[%s4941_s19 + $0x20] sm:$0xff] }
 0x2cc   :  { %v339_v57 = vmul.f32 %v2733_v54, %v330_v55 }
 0x2cd   :  { %v3615_v58 = vpop.eup %3614 }
 0x2ce   :  { %v3617_v59 = vpop.eup %3616  ;;  %v348_v60 = vadd.f32 %v2734_v56, %v339_v57  ;;  %v332_v62 = vmul.f32 %v3615_v58, %v308_v33  ;;  %v4089_v58 = vld [vmem:[%s4940_s18 + $0x20] sm:$0xff] }
 0x2cf   :  { %v331_v61 = vmul.f32 %v3617_v59, %v307_v34 }
 0x2d0   :  { %3125 = vmatmul.mubr.msk.f32.vlgmr.msra.gmra.mxu1 %vm291_vm2, %v348_v60  ;;  %v341_v1 = vmul.f32 %v2733_v54, %v332_v62  ;;  %v4097_v60 = vld [vmem:[%s4940_s18 + $0x18] sm:$0xff]  ;;  %v4105_v62 = vld [vmem:[%s4940_s18 + $0x10] sm:$0xff] }
 0x2d1   :  { %3127 = vmatprep.mubr.msk.f32.mxu1 %vm3722_vm1, %v3721_v4  ;;  %v340_v63 = vmul.f32 %v2733_v54, %v331_v61  ;;  %v4073_v54 = vld [vmem:[%s4940_s18 + $0x30] sm:$0xff] }
 0x2d2   :  { %v350_v2 = vadd.f32 %v2734_v56, %v341_v1 }
 0x2d3   :  { %v349_v0 = vadd.f32 %v2734_v56, %v340_v63  ;;  %v4081_v56 = vld [vmem:[%s4940_s18 + $0x28] sm:$0xff] }
 0x2d5   :  { %3128 = vmatmul.mubr.msk.f32.gmra.mxu1 %vm291_vm2, %v349_v0  ;;  %v4113_v0 = vld [vmem:[%s4940_s18 + $0x8] sm:$0xff] }
 0x2d6   :  { %3130 = vmatprep.mubr.msk.f32.mxu1 %vm3722_vm1, %v3721_v4 }
 0x2d9   :  { %3131 = vmatmul.mubr.msk.f32.gmra.mxu1 %vm291_vm2, %v350_v2  ;;  %v4121_v2 = vld [vmem:[%s4940_s18] sm:$0xff] }
 0x2da   :  { %3139 = vmatprep.mubr.msk.f32.mxu1 %vm3722_vm1, %v3721_v4 }
 0x390   :  { %v437_v3 = vpop.f32.mrf.mxu1 }
 0x391   :  { %v3953_v11 = vadd.f32 %v2735_v6, %v437_v3 }
 0x392   :  { %v3126_v5 = vpop.f32.mrf.mxu1 }
 0x393   :  { %v4143_v5 = vld [vmem:[%s4943_s21 + $0x40] sm:$0xff] }
 0x395   :  { %v442_v7 = vpop.f32.mrf.mxu1 }
 0x396   :  { %v3949_v8 = vadd.f32 %v2735_v6, %v442_v7  ;;  %v4155_v7 = vld [vmem:[%s4943_s21 + $0x30] sm:$0xff] }
 0x397   :  { %v3129_v9 = vpop.f32.mrf.mxu1 }
 0x398   :  { %456 = vrot.lane.b32.xlu1 %v3949_v8, %s3723_s3 }
 0x399   :  { %v447_v10 = vpop.f32.mrf.mxu1 }
 0x39a   :  { %v3955_v12 = vadd.f32 %v2735_v6, %v447_v10  ;;  %v4148_v6 = vld [vmem:[%s4943_s21 + $0x38] sm:$0xff] }
 0x39b   :  { %v3132_v13 = vpop.f32.mrf.mxu1 }
 0x39c   :  { %454 = vrot.lane.b32.xlu1 %v3953_v11, %s3723_s3  ;;  %458 = vrot.lane.b32.xlu0 %v3955_v12, %s3723_s3 }
 0x3a0   :  { %612 = vrot.lane.b32.xlu1 %v3953_v11, %s3724_s0  ;;  %614 = vrot.lane.b32.xlu0 %v3949_v8, %s3724_s0 }
 0x3a4   :  { %616 = vrot.lane.b32.xlu1 %v3955_v12, %s3724_s0 }
 0x40a   :  { %v457_v16 = vpop.permute.xlu1 %456 }
 0x40e   :  { %v455_v17 = vpop.permute.xlu1 %454  ;;  %v459_v18 = vpop.permute.xlu0 %458 }
 0x40f   :  { %3134 = vmatpush3.msk.msra.mxu1 %vm490_vm4, %v459_v18 }
 0x410   :  { %3135 = vmatprep.subr.mxu1 %v3721_v4 }
 0x411   :  { %3136 = vmatpush3.msra.mxu1 %v457_v16 }
 0x412   :  { %v613_v20 = vpop.permute.xlu1 %612  ;;  %3137 = vmatprep.subr.mxu1 %v3721_v4  ;;  %v615_v24 = vpop.permute.xlu0 %614 }
 0x413   :  { %3138 = vmatpush3.msra.mxu1 %v455_v17 }
 0x414   :  { %3140 = vmatmul.mubr.msk.f32.vlgmr.msra.gmra.mxu1 %vm462_vm5, %v265_v19  ;;  %3199 = vmatprep.subr.mxu1 %v3721_v4 }
 0x415   :  { %3142 = vmatprep.mubr.msk.f32.mxu1 %vm3722_vm1, %v3721_v4 }
 0x416   :  { %v617_v23 = vpop.permute.xlu1 %616 }
 0x417   :  { %3167 = vmatpush3.msk.msra.mxu0 %vm490_vm4, %v617_v23  ;;  %v4197_v23 = vld [vmem:[%s4943_s21 + $0x10] sm:$0xff] }
 0x418   :  { %3143 = vmatmul.mubr.msk.f32.gmra.mxu1 %vm462_vm5, %v266_v22  ;;  %3168 = vmatprep.subr.mxu0 %v3721_v4 }
 0x419   :  { %3169 = vmatpush3.msra.mxu0 %v615_v24  ;;  %3145 = vmatprep.mubr.msk.f32.mxu1 %vm3722_vm1, %v3721_v4  ;;  %v4204_v24 = vld [vmem:[%s4943_s21 + $0x8] sm:$0xff] }
 0x41a   :  { %3170 = vmatprep.subr.mxu0 %v3721_v4 }
 0x41b   :  { %3171 = vmatpush3.msra.mxu0 %v613_v20  ;;  %v4183_v20 = vld [vmem:[%s4943_s21 + $0x20] sm:$0xff] }
 0x41c   :  { %3146 = vmatmul.mubr.msk.f32.gmra.mxu1 %vm462_vm5, %v267_v25  ;;  %3173 = vmatmul.mubr.msk.f32.vlgmr.msra.gmra.mxu0 %vm462_vm5, %v265_v19  ;;  %v4176_v19 = vld [vmem:[%s4943_s21 + $0x28] sm:$0xff] }
 0x41d   :  { %3148 = vmatprep.mubr.msk.f32.mxu1 %vm3722_vm1, %v3721_v4  ;;  %3175 = vmatprep.mubr.msk.f32.mxu0 %vm3722_vm1, %v3721_v4 }
 0x41e   :  { %3226 = vmatprep.subr.mxu0 %v3721_v4 }
 0x41f   :  { %3227 = vmatpush3.msra.mxu0 %v4143_v5 }
 0x420   :  { %3149 = vmatmul.mubr.msk.f32.gmra.mxu1 %vm462_vm5, %v268_v26  ;;  %3176 = vmatmul.mubr.msk.f32.gmra.mxu0 %vm462_vm5, %v266_v22  ;;  %v4190_v22 = vld [vmem:[%s4943_s21 + $0x18] sm:$0xff] }
 0x421   :  { %3151 = vmatprep.mubr.msk.f32.mxu1 %vm3722_vm1, %v3721_v4  ;;  %3178 = vmatprep.mubr.msk.f32.mxu0 %vm3722_vm1, %v3721_v4 }
 0x422   :  { %3228 = vmatprep.subr.mxu0 %v3721_v4 }
 0x423   :  { %3229 = vmatpush3.msra.mxu0 %v4148_v6 }
 0x424   :  { %3152 = vmatmul.mubr.msk.f32.gmra.mxu1 %vm462_vm5, %v269_v27  ;;  %3179 = vmatmul.mubr.msk.f32.gmra.mxu0 %vm462_vm5, %v267_v25  ;;  %v4211_v25 = vld [vmem:[%s4943_s21] sm:$0xff] }
 0x425   :  { %3154 = vmatprep.mubr.msk.f32.mxu1 %vm3722_vm1, %v3721_v4  ;;  %3181 = vmatprep.mubr.msk.f32.mxu0 %vm3722_vm1, %v3721_v4 }
 0x426   :  { %3230 = vmatprep.subr.mxu0 %v3721_v4 }
 0x427   :  { %3231 = vmatpush3.msra.mxu0 %v4155_v7 }
 0x428   :  { %3155 = vmatmul.mubr.msk.f32.gmra.mxu1 %vm462_vm5, %v270_v28  ;;  %3182 = vmatmul.mubr.msk.f32.gmra.mxu0 %vm462_vm5, %v268_v26 }
 0x429   :  { %3157 = vmatprep.mubr.msk.f32.mxu1 %vm3722_vm1, %v3721_v4  ;;  %3184 = vmatprep.mubr.msk.f32.mxu0 %vm3722_vm1, %v3721_v4 }
 0x42a   :  { %3232 = vmatprep.subr.mxu0 %v3721_v4 }
 0x42b   :  { %3233 = vmatpush3.msra.mxu0 %v4176_v19 }
 0x42c   :  { %3158 = vmatmul.mubr.msk.f32.gmra.mxu1 %vm462_vm5, %v271_v29  ;;  %3185 = vmatmul.mubr.msk.f32.gmra.mxu0 %vm462_vm5, %v269_v27 }
 0x42d   :  { %3160 = vmatprep.mubr.msk.f32.mxu1 %vm3722_vm1, %v3721_v4  ;;  %3187 = vmatprep.mubr.msk.f32.mxu0 %vm3722_vm1, %v3721_v4 }
 0x42e   :  { %3234 = vmatprep.subr.mxu0 %v3721_v4 }
 0x42f   :  { %3235 = vmatpush3.msra.mxu0 %v4183_v20 }
 0x430   :  { %3161 = vmatmul.mubr.msk.f32.gmra.mxu1 %vm462_vm5, %v272_v30  ;;  %3188 = vmatmul.mubr.msk.f32.gmra.mxu0 %vm462_vm5, %v270_v28 }
 0x431   :  { %3163 = vmatprep.mubr.msk.f32.mxu1 %vm3722_vm1, %v3721_v4  ;;  %3190 = vmatprep.mubr.msk.f32.mxu0 %vm3722_vm1, %v3721_v4 }
 0x432   :  { %3236 = vmatprep.subr.mxu0 %v3721_v4 }
 0x433   :  { %3237 = vmatpush3.msra.mxu0 %v4190_v22 }
 0x434   :  { %3164 = vmatmul.mubr.msk.f32.gmra.mxu1 %vm462_vm5, %v273_v31  ;;  %3191 = vmatmul.mubr.msk.f32.gmra.mxu0 %vm462_vm5, %v271_v29 }
 0x435   :  { %3217 = vmatprep.mubr.msk.f32.mxu1 %vm3722_vm1, %v3721_v4  ;;  %3193 = vmatprep.mubr.msk.f32.mxu0 %vm3722_vm1, %v3721_v4 }
 0x436   :  { %3238 = vmatprep.subr.mxu0 %v3721_v4 }
 0x437   :  { %3239 = vmatpush3.msra.mxu0 %v4197_v23 }
 0x438   :  { %3194 = vmatmul.mubr.msk.f32.gmra.mxu0 %vm462_vm5, %v272_v30  ;;  %3240 = vmatprep.subr.mxu0 %v3721_v4 }
 0x439   :  { %3196 = vmatprep.mubr.msk.f32.mxu0 %vm3722_vm1, %v3721_v4  ;;  %3241 = vmatpush3.msra.mxu0 %v4204_v24 }
 0x43a   :  { %3242 = vmatprep.subr.mxu0 %v3721_v4 }
 0x43b   :  { %3243 = vmatpush3.msra.mxu0 %v4211_v25 }
 0x43c   :  { %3197 = vmatmul.mubr.msk.f32.gmra.mxu0 %vm462_vm5, %v273_v31  ;;  %3280 = vmatprep.subr.mxu0 %v3721_v4 }
 0x43d   :  { %3244 = vmatprep.mubr.msk.f32.mxu0 %vm3722_vm1, %v3721_v4 }
 0x4d4   :  { %v559_v32 = vpop.f32.mrf.mxu1 }
 0x4d5   :  { %v603_v3 = vmul.f32 %v559_v32, %v4121_v2 }
 0x4d6   :  { %v3141_v33 = vpop.f32.mrf.mxu1 }
 0x4d8   :  { %v564_v34 = vpop.f32.mrf.mxu1 }
 0x4d9   :  { %v604_v1 = vmul.f32 %v564_v34, %v4113_v0 }
 0x4da   :  { %v3144_v35 = vpop.f32.mrf.mxu1 }
 0x4dc   :  { %v569_v36 = vpop.f32.mrf.mxu1  ;;  %v688_v26 = vpop.f32.mrf.mxu0 }
 0x4dd   :  { %v605_v63 = vmul.f32 %v569_v36, %v4105_v62 }
 0x4de   :  { %v3147_v37 = vpop.f32.mrf.mxu1  ;;  %v3174_v27 = vpop.f32.mrf.mxu0 }
 0x4e0   :  { %v574_v38 = vpop.f32.mrf.mxu1  ;;  %v693_v28 = vpop.f32.mrf.mxu0 }
 0x4e1   :  { %v606_v61 = vmul.f32 %v574_v38, %v4097_v60 }
 0x4e2   :  { %v3150_v39 = vpop.f32.mrf.mxu1  ;;  %v3177_v29 = vpop.f32.mrf.mxu0 }
 0x4e4   :  { %v579_v40 = vpop.f32.mrf.mxu1  ;;  %v698_v30 = vpop.f32.mrf.mxu0 }
 0x4e5   :  { %v607_v59 = vmul.f32 %v579_v40, %v4089_v58 }
 0x4e6   :  { %v3153_v41 = vpop.f32.mrf.mxu1  ;;  %v3180_v31 = vpop.f32.mrf.mxu0 }
 0x4e8   :  { %v584_v42 = vpop.f32.mrf.mxu1  ;;  %v703_v32 = vpop.f32.mrf.mxu0 }
 0x4e9   :  { %v608_v57 = vmul.f32 %v584_v42, %v4081_v56 }
 0x4ea   :  { %v3156_v43 = vpop.f32.mrf.mxu1  ;;  %v3183_v33 = vpop.f32.mrf.mxu0 }
 0x4ec   :  { %v589_v44 = vpop.f32.mrf.mxu1  ;;  %v708_v34 = vpop.f32.mrf.mxu0 }
 0x4ed   :  { %v609_v55 = vmul.f32 %v589_v44, %v4073_v54 }
 0x4ee   :  { %v3159_v45 = vpop.f32.mrf.mxu1  ;;  %v3186_v35 = vpop.f32.mrf.mxu0 }
 0x4f0   :  { %v594_v46 = vpop.f32.mrf.mxu1  ;;  %v713_v36 = vpop.f32.mrf.mxu0 }
 0x4f1   :  { %v610_v53 = vmul.f32 %v594_v46, %v4065_v51 }
 0x4f2   :  { %v3162_v47 = vpop.f32.mrf.mxu1  ;;  %v3189_v37 = vpop.f32.mrf.mxu0 }
 0x4f3   :  { %v737_v47 = vmul.f32 %v713_v36, %v4081_v56 }
 0x4f4   :  { %v599_v49 = vpop.f32.mrf.mxu1  ;;  %v718_v38 = vpop.f32.mrf.mxu0 }
 0x4f5   :  { %v611_v50 = vmul.f32 %v599_v49, %v4059_v48  ;;  %v738_v46 = vmul.f32 %v718_v38, %v4073_v54  ;;  %v736_v49 = vmul.f32 %v708_v34, %v4089_v58 }
 0x4f6   :  { %v3165_v52 = vpop.f32.mrf.mxu1  ;;  %v3192_v39 = vpop.f32.mrf.mxu0 }
 0x4f7   :  { %3200 = vmatpush3.xpose.msk.msra.mxu1 %vm291_vm2, %v611_v50  ;;  %v735_v50 = vmul.f32 %v703_v32, %v4097_v60  ;;  %v732_v52 = vmul.f32 %v688_v26, %v4121_v2 }
 0x4f8   :  { %3201 = vmatprep.subr.mxu1 %v3721_v4  ;;  %v723_v40 = vpop.f32.mrf.mxu0 }
 0x4f9   :  { %v739_v43 = vmul.f32 %v723_v40, %v4065_v51  ;;  %v733_v51 = vmul.f32 %v693_v28, %v4113_v0 }
 0x4fa   :  { %v3195_v41 = vpop.f32.mrf.mxu0 }
 0x4fb   :  { %3202 = vmatpush3.xpose.msk.msra.mxu1 %vm291_vm2, %v610_v53  ;;  %v1061_v41 = vld [vmem:[%s4930_s8] sm:$0xff] }
 0x4fc   :  { %3203 = vmatprep.subr.mxu1 %v3721_v4  ;;  %v728_v42 = vpop.f32.mrf.mxu0 }
 0x4fd   :  { %v740_v44 = vmul.f32 %v728_v42, %v4059_v48  ;;  %v734_v48 = vmul.f32 %v698_v30, %v4105_v62  ;;  %v4239_v62 = vld [vmem:[%s4942_s20] sm:$0xff] }
 0x4fe   :  { %v3198_v45 = vpop.f32.mrf.mxu0 }
 0x4ff   :  { %3204 = vmatpush3.xpose.msk.msra.mxu1 %vm291_vm2, %v609_v55 }
 0x500   :  { %3205 = vmatprep.subr.mxu1 %v3721_v4 }
 0x503   :  { %3206 = vmatpush3.xpose.msk.msra.mxu1 %vm291_vm2, %v608_v57 }
 0x504   :  { %3207 = vmatprep.subr.mxu1 %v3721_v4 }
 0x507   :  { %3208 = vmatpush3.xpose.msk.msra.mxu1 %vm291_vm2, %v607_v59 }
 0x508   :  { %3209 = vmatprep.subr.mxu1 %v3721_v4 }
 0x50b   :  { %3210 = vmatpush3.xpose.msk.msra.mxu1 %vm291_vm2, %v606_v61 }
 0x50c   :  { %3211 = vmatprep.subr.mxu1 %v3721_v4 }
 0x50f   :  { %3212 = vmatpush3.xpose.msk.msra.mxu1 %vm291_vm2, %v605_v63 }
 0x510   :  { %3213 = vmatprep.subr.mxu1 %v3721_v4 }
 0x513   :  { %3214 = vmatpush3.xpose.msk.msra.mxu1 %vm291_vm2, %v604_v1  ;;  %v4245_v1 = vld [vmem:[%s4942_s20 + $0x8] sm:$0xff] }
 0x514   :  { %3215 = vmatprep.subr.mxu1 %v3721_v4  ;;  %v278_v26 = vsub.f32 1.0, %v4245_v1 }
 0x517   :  { %3216 = vmatpush3.xpose.msk.msra.mxu1 %vm291_vm2, %v603_v3 }
 0x518   :  { %3253 = vmatprep.subr.mxu1 %v3721_v4 }
 0x51a   :  { %3218 = vmatmul.mubr.msk.f32.vlgmr.msra.gmra.mxu1 %vm291_vm2, %v3953_v11 }
 0x51b   :  { %3220 = vmatprep.mubr.msk.f32.mxu1 %vm3722_vm1, %v3721_v4  ;;  %3254 = vmatpush3.msra.mxu1 %v740_v44 }
 0x51c   :  { %3255 = vmatprep.subr.mxu1 %v3721_v4 }
 0x51d   :  { %3256 = vmatpush3.msra.mxu1 %v739_v43 }
 0x51e   :  { %3221 = vmatmul.mubr.msk.f32.gmra.mxu1 %vm291_vm2, %v3949_v8  ;;  %3257 = vmatprep.subr.mxu1 %v3721_v4 }
 0x51f   :  { %3223 = vmatprep.mubr.msk.f32.mxu1 %vm3722_vm1, %v3721_v4  ;;  %3258 = vmatpush3.msra.mxu1 %v738_v46 }
 0x520   :  { %3259 = vmatprep.subr.mxu1 %v3721_v4 }
 0x521   :  { %3260 = vmatpush3.msra.mxu1 %v737_v47 }
 0x522   :  { %3224 = vmatmul.mubr.msk.f32.gmra.mxu1 %vm291_vm2, %v3955_v12  ;;  %3261 = vmatprep.subr.mxu1 %v3721_v4 }
 0x523   :  { %3271 = vmatprep.mubr.msk.f32.mxu1 %vm3722_vm1, %v3721_v4  ;;  %3262 = vmatpush3.msra.mxu1 %v736_v49  ;;  %v2777_v49 = vld [vmem:[%s4931_s9] ss:$0 sm:$0xff] }
 0x524   :  { %3263 = vmatprep.subr.mxu1 %v3721_v4 }
 0x525   :  { %3264 = vmatpush3.msra.mxu1 %v735_v50 }
 0x526   :  { %3265 = vmatprep.subr.mxu1 %v3721_v4 }
 0x527   :  { %3266 = vmatpush3.msra.mxu1 %v734_v48 }
 0x528   :  { %3267 = vmatprep.subr.mxu1 %v3721_v4 }
 0x529   :  { %3268 = vmatpush3.msra.mxu1 %v733_v51 }
 0x52a   :  { %3269 = vmatprep.subr.mxu1 %v3721_v4 }
 0x52b   :  { %3270 = vmatpush3.msra.mxu1 %v732_v52 }
 0x52c   :  { %3297 = vmatprep.subr.mxu1 %v3721_v4 }
 0x5da   :  { %v4161_v8 = vpop.f32.mrf.mxu1 }
 0x5db   :  { %v855_v9 = vsel %vm854_vm6, %v4161_v8, -inf }
 0x5dc   :  { %856 = vmax.xlane.f32.xlu0 %v855_v9  ;;  %v3219_v10 = vpop.f32.mrf.mxu1 }
 0x5de   :  { %v4165_v11 = vpop.f32.mrf.mxu1 }
 0x5df   :  { %v858_v12 = vsel %vm854_vm6, %v4165_v11, -inf }
 0x5e0   :  { %859 = vmax.xlane.f32.xlu1 %v858_v12  ;;  %v3222_v13 = vpop.f32.mrf.mxu1  ;;  %v1063_v12 = vld [vmem:[%s4930_s8 + $0x10] sm:$0xff] }
 0x5e1   :  { %v1062_v13 = vld [vmem:[%s4930_s8 + $0x8] sm:$0xff] }
 0x5e2   :  { %v4169_v16 = vpop.f32.mrf.mxu1 }
 0x5e3   :  { %v862_v17 = vsel %vm861_vm7, %v4169_v16, -inf }
 0x5e4   :  { %863 = vmax.xlane.f32.xlu0 %v862_v17  ;;  %v3225_v18 = vpop.f32.mrf.mxu1 }
 0x665   :  { %v857_v53 = vpop.xlane.xlu0 %856 }
 0x666   :  { %v865_v54 = vsub.f32 %v4161_v8, %v857_v53  ;;  %v4254_v8 = vld [vmem:[%s4942_s20 + $0x10] sm:$0x3] }
 0x667   :  { %v279_v30 = vsub.f32 1.0, %v4254_v8 }
 0x668   :  { %v868_v55 = vmul.f32 1.442695, %v865_v54 }
 0x669   :  { %v860_v56 = vpop.xlane.xlu1 %859 }
 0x66a   :  { %3618 = vpow2.f32 %v868_v55  ;;  %v866_v57 = vsub.f32 %v4165_v11, %v860_v56  ;;  %v1064_v11 = vld [vmem:[%s4930_s8 + $0x18] sm:$0xff] }
 0x66c   :  { %v870_v58 = vmul.f32 1.442695, %v866_v57 }
 0x66d   :  { %v864_v59 = vpop.xlane.xlu0 %863 }
 0x66e   :  { %3620 = vpow2.f32 %v870_v58  ;;  %v867_v60 = vsub.f32 %v4169_v16, %v864_v59  ;;  %v277_v16 = vsub.f32 1.0, %v4239_v62 }
 0x670   :  { %v872_v61 = vmul.f32 1.442695, %v867_v60 }
 0x672   :  { %3622 = vpow2.f32 %v872_v61 }
 0x677   :  { %v3619_v63 = vpop.eup %3618 }
 0x678   :  { %v874_v0 = vmul.f32 %v3619_v63, %v4239_v62 }
 0x67a   :  { %3245 = vmatmul.mubr.msk.f32.vlgmr.msra.gmra.mxu0 %vm854_vm6, %v874_v0 }
 0x67b   :  { %v3621_v2 = vpop.eup %3620  ;;  %3247 = vmatprep.mubr.msk.f32.mxu0 %vm3722_vm1, %v3721_v4  ;;  %3281 = vmatpush3.msra.mxu0 %v1064_v11 }
 0x67c   :  { %v875_v3 = vmul.f32 %v3621_v2, %v4245_v1  ;;  %3282 = vmatprep.subr.mxu0 %v3721_v4 }
 0x67d   :  { %3283 = vmatpush3.msra.mxu0 %v1063_v12 }
 0x67e   :  { %3248 = vmatmul.mubr.msk.f32.gmra.mxu0 %vm854_vm6, %v875_v3  ;;  %3284 = vmatprep.subr.mxu0 %v3721_v4 }
 0x67f   :  { %v3623_v9 = vpop.eup %3622  ;;  %3250 = vmatprep.mubr.msk.f32.mxu0 %vm3722_vm1, %v3721_v4  ;;  %3285 = vmatpush3.msra.mxu0 %v1062_v13 }
 0x680   :  { %v876_v10 = vmul.f32 %v3623_v9, %v4254_v8  ;;  %3286 = vmatprep.subr.mxu0 %v3721_v4  ;;  %v2839_v8 = vld [vmem:[%s4930_s8 + $0x20] sm:$0xff] }
 0x681   :  { %3287 = vmatpush3.msra.mxu0 %v1061_v41 }
 0x682   :  { %3251 = vmatmul.mubr.msk.f32.gmra.mxu0 %vm854_vm6, %v876_v10  ;;  %3314 = vmatprep.subr.mxu0 %v3721_v4 }
 0x683   :  { %3288 = vmatprep.mubr.msk.f32.mxu0 %vm3722_vm1, %v3721_v4 }
 0x73a   :  { %v952_v17 = vpop.f32.mrf.mxu0 }
 0x73b   :  { %v953_v18 = vadd.f32 %v952_v17, %v277_v16 }
 0x73c   :  { %v3246_v27 = vpop.f32.mrf.mxu0 }
 0x73d   :  { %3624 = vrcp.f32 %v953_v18 }
 0x73e   :  { %v957_v28 = vpop.f32.mrf.mxu0 }
 0x73f   :  { %v958_v29 = vadd.f32 %v957_v28, %v278_v26 }
 0x740   :  { %v3249_v31 = vpop.f32.mrf.mxu0 }
 0x741   :  { %3626 = vrcp.f32 %v958_v29  ;;  %v1226_v31 = vld [vmem:[%s4934_s12 + $0x18] sm:$0xff] }
 0x742   :  { %v962_v32 = vpop.f32.mrf.mxu0 }
 0x743   :  { %v963_v33 = vadd.f32 %v962_v32, %v279_v30  ;;  %v1225_v32 = vld [vmem:[%s4934_s12 + $0x10] sm:$0xff] }
 0x744   :  { %v3252_v34 = vpop.f32.mrf.mxu0 }
 0x745   :  { %3628 = vrcp.f32 %v963_v33  ;;  %v1224_v33 = vld [vmem:[%s4934_s12 + $0x8] sm:$0xff]  ;;  %v1223_v34 = vld [vmem:[%s4934_s12] sm:$0xff] }
 0x74a   :  { %v3625_v35 = vpop.eup %3624 }
 0x74b   :  { %v969_v36 = vmul.f32 %v3625_v35, %v874_v0  ;;  %v1353_v35 = vld [vmem:[%s4936_s14 + $0x78] sm:$0xff] }
 0x74d   :  { %3272 = vmatmul.mubr.msk.f32.vlgmr.msra.gmra.mxu1 %vm854_vm6, %v969_v36  ;;  %v1352_v36 = vld [vmem:[%s4936_s14 + $0x70] sm:$0xff] }
 0x74e   :  { %v3627_v37 = vpop.eup %3626  ;;  %3274 = vmatprep.mubr.msk.f32.mxu1 %vm3722_vm1, %v3721_v4  ;;  %3298 = vmatpush3.msra.mxu1 %v1226_v31 }
 0x74f   :  { %v970_v38 = vmul.f32 %v3627_v37, %v875_v3  ;;  %3299 = vmatprep.subr.mxu1 %v3721_v4  ;;  %v1351_v37 = vld [vmem:[%s4936_s14 + $0x68] sm:$0xff] }
 0x750   :  { %3300 = vmatpush3.msra.mxu1 %v1225_v32 }
 0x751   :  { %3275 = vmatmul.mubr.msk.f32.gmra.mxu1 %vm854_vm6, %v970_v38  ;;  %3301 = vmatprep.subr.mxu1 %v3721_v4  ;;  %v1350_v38 = vld [vmem:[%s4936_s14 + $0x60] sm:$0xff] }
 0x752   :  { %v3629_v39 = vpop.eup %3628  ;;  %3277 = vmatprep.mubr.msk.f32.mxu1 %vm3722_vm1, %v3721_v4  ;;  %3302 = vmatpush3.msra.mxu1 %v1224_v33 }
 0x753   :  { %v971_v40 = vmul.f32 %v3629_v39, %v876_v10  ;;  %3303 = vmatprep.subr.mxu1 %v3721_v4 }
 0x754   :  { %3304 = vmatpush3.msra.mxu1 %v1223_v34 }
 0x755   :  { %3278 = vmatmul.mubr.msk.f32.gmra.mxu1 %vm854_vm6, %v971_v40  ;;  %3355 = vmatprep.subr.mxu1 %v3721_v4 }
 0x756   :  { %3305 = vmatprep.mubr.msk.f32.mxu1 %vm3722_vm1, %v3721_v4 }
 0x80d   :  { %v1047_v42 = vpop.f32.mrf.mxu1 }
 0x80e   :  { %3289 = vmatmul.mubr.msk.f32.vlgmr.msra.gmra.mxu0 %vm291_vm2, %v1047_v42 }
 0x80f   :  { %v3273_v43 = vpop.f32.mrf.mxu1  ;;  %3291 = vmatprep.mubr.msk.f32.mxu0 %vm3722_vm1, %v3721_v4  ;;  %3315 = vmatpush3.msra.mxu0 %v1353_v35 }
 0x810   :  { %3316 = vmatprep.subr.mxu0 %v3721_v4 }
 0x811   :  { %v1052_v44 = vpop.f32.mrf.mxu1  ;;  %3317 = vmatpush3.msra.mxu0 %v1352_v36 }
 0x812   :  { %3292 = vmatmul.mubr.msk.f32.gmra.mxu0 %vm291_vm2, %v1052_v44  ;;  %3318 = vmatprep.subr.mxu0 %v3721_v4 }
 0x813   :  { %v3276_v45 = vpop.f32.mrf.mxu1  ;;  %3294 = vmatprep.mubr.msk.f32.mxu0 %vm3722_vm1, %v3721_v4  ;;  %3319 = vmatpush3.msra.mxu0 %v1351_v37 }
 0x814   :  { %3320 = vmatprep.subr.mxu0 %v3721_v4 }
 0x815   :  { %v1057_v46 = vpop.f32.mrf.mxu1  ;;  %3321 = vmatpush3.msra.mxu0 %v1350_v38 }
 0x816   :  { %3295 = vmatmul.mubr.msk.f32.gmra.mxu0 %vm291_vm2, %v1057_v46  ;;  %3322 = vmatprep.subr.mxu0 %v3721_v4 }
 0x817   :  { %v3279_v47 = vpop.f32.mrf.mxu1  ;;  %3346 = vmatprep.mubr.msk.f32.mxu0 %vm3722_vm1, %v3721_v4 }
 0x8ce   :  { %v1147_v50 = vpop.f32.mrf.mxu0 }
 0x8cf   :  { %v1148_v48 = vadd.f32 %v2777_v49, %v1147_v50  ;;  %v2781_v50 = vld [vmem:[%s4932_s10] ss:$0 sm:$0xff] }
 0x8d0   :  { %v3290_v51 = vpop.f32.mrf.mxu0 }
 0x8d1   :  { %v4310_v52 = vadd.f32 %v1148_v48, %v3894_v14  ;;  %v2782_v51 = vld [vmem:[%s4933_s11] ss:$0 sm:$0xff] }
 0x8d2   :  { %v1152_v53 = vpop.f32.mrf.mxu0 }
 0x8d3   :  { %v1153_v54 = vadd.f32 %v2777_v49, %v1152_v53  ;;  %v1166_v55 = vsel %vm291_vm2, %v4310_v52, 0.0 }
 0x8d4   :  { %1167 = vadd.xlane.f32.xlu0 %v1166_v55  ;;  %v3293_v56 = vpop.f32.mrf.mxu0 }
 0x8d5   :  { %v4315_v57 = vadd.f32 %v1153_v54, %v3896_v15 }
 0x8d6   :  { %v1157_v58 = vpop.f32.mrf.mxu0 }
 0x8d7   :  { %v1158_v59 = vadd.f32 %v2777_v49, %v1157_v58  ;;  %v1169_v60 = vsel %vm291_vm2, %v4315_v57, 0.0 }
 0x8d8   :  { %1170 = vadd.xlane.f32.xlu0 %v1169_v60  ;;  %v3296_v61 = vpop.f32.mrf.mxu0 }
 0x8d9   :  { %v4320_v14 = vadd.f32 %v1158_v59, %v3903_v21 }
 0x8db   :  { %v1172_v63 = vsel %vm298_vm3, %v4320_v14, 0.0 }
 0x8dc   :  { %1173 = vadd.xlane.f32.xlu1 %v1172_v63 }
 0x95d   :  { %v1168_v0 = vpop.xlane.xlu0 %1167 }
 0x95e   :  { %v1175_v2 = vmul.f32 0.03125, %v1168_v0 }
 0x960   :  { %v1178_v3 = vsub.f32 %v4310_v52, %v1175_v2  ;;  %v1349_v2 = vld [vmem:[%s4936_s14 + $0x58] sm:$0xff] }
 0x961   :  { %v1171_v15 = vpop.xlane.xlu0 %1170  ;;  %3323 = vmatpush3.msra.mxu0 %v1349_v2 }
 0x962   :  { %v1176_v9 = vmul.f32 0.03125, %v1171_v15  ;;  %v1181_v10 = vmul.f32 %v1178_v3, %v1178_v3  ;;  %3324 = vmatprep.subr.mxu0 %v3721_v4  ;;  %v1347_v15 = vld [vmem:[%s4936_s14 + $0x48] sm:$0xff] }
 0x964   :  { %v1179_v11 = vsub.f32 %v4315_v57, %v1176_v9  ;;  %v1184_v12 = vsel %vm291_vm2, %v1181_v10, 0.0  ;;  %v1346_v9 = vld [vmem:[%s4936_s14 + $0x40] sm:$0xff]  ;;  %v1345_v10 = vld [vmem:[%s4936_s14 + $0x38] sm:$0xff] }
 0x965   :  { %1185 = vadd.xlane.f32.xlu0 %v1184_v12  ;;  %v1174_v13 = vpop.xlane.xlu1 %1173  ;;  %v1343_v12 = vld [vmem:[%s4936_s14 + $0x28] sm:$0xff] }
 0x966   :  { %v1177_v17 = vmul.f32 0.03125, %v1174_v13  ;;  %v1182_v21 = vmul.f32 %v1179_v11, %v1179_v11  ;;  %v1342_v13 = vld [vmem:[%s4936_s14 + $0x20] sm:$0xff] }
 0x968   :  { %v1180_v18 = vsub.f32 %v4320_v14, %v1177_v17  ;;  %v1187_v27 = vsel %vm291_vm2, %v1182_v21, 0.0  ;;  %v1341_v17 = vld [vmem:[%s4936_s14 + $0x18] sm:$0xff]  ;;  %v1340_v21 = vld [vmem:[%s4936_s14 + $0x10] sm:$0xff] }
 0x969   :  { %1188 = vadd.xlane.f32.xlu1 %v1187_v27  ;;  %v1338_v27 = vld [vmem:[%s4936_s14] sm:$0xff] }
 0x96a   :  { %v1183_v28 = vmul.f32 %v1180_v18, %v1180_v18 }
 0x96c   :  { %v1190_v29 = vsel %vm298_vm3, %v1183_v28, 0.0  ;;  %v2783_v28 = vld [vmem:[%s4935_s13] ss:$0 sm:$0xff] }
 0x96d   :  { %1191 = vadd.xlane.f32.xlu0 %v1190_v29 }
 0x9ee   :  { %v1186_v39 = vpop.xlane.xlu0 %1185 }
 0x9ef   :  { %v1193_v40 = vmul.f32 0.03125, %v1186_v39 }
 0x9f1   :  { %v1196_v41 = vadd.f32 1e-05, %v1193_v40 }
 0x9f2   :  { %v1189_v42 = vpop.xlane.xlu1 %1188 }
 0x9f3   :  { %3630 = vrsqrt.f32 %v1196_v41  ;;  %v1194_v43 = vmul.f32 0.03125, %v1189_v42 }
 0x9f5   :  { %v1197_v44 = vadd.f32 1e-05, %v1194_v43 }
 0x9f6   :  { %v1192_v45 = vpop.xlane.xlu0 %1191 }
 0x9f7   :  { %3632 = vrsqrt.f32 %v1197_v44  ;;  %v1195_v46 = vmul.f32 0.03125, %v1192_v45 }
 0x9f9   :  { %v1198_v47 = vadd.f32 1e-05, %v1195_v46 }
 0x9fb   :  { %3634 = vrsqrt.f32 %v1198_v47 }
 0xa00   :  { %v3631_v49 = vpop.eup %3630 }
 0xa01   :  { %v1202_v48 = vmul.f32 %v3631_v49, %v1178_v3  ;;  %v1348_v3 = vld [vmem:[%s4936_s14 + $0x50] sm:$0xff] }
 0xa02   :  { %3325 = vmatpush3.msra.mxu0 %v1348_v3 }
 0xa03   :  { %v1211_v53 = vmul.f32 %v2781_v50, %v1202_v48  ;;  %3326 = vmatprep.subr.mxu0 %v3721_v4 }
 0xa04   :  { %v3633_v54 = vpop.eup %3632  ;;  %3327 = vmatpush3.msra.mxu0 %v1347_v15 }
 0xa05   :  { %v1220_v55 = vadd.f32 %v2782_v51, %v1211_v53  ;;  %v1203_v56 = vmul.f32 %v3633_v54, %v1179_v11  ;;  %3328 = vmatprep.subr.mxu0 %v3721_v4  ;;  %v1344_v11 = vld [vmem:[%s4936_s14 + $0x30] sm:$0xff] }
 0xa06   :  { %3329 = vmatpush3.msra.mxu0 %v1346_v9 }
 0xa07   :  { %3306 = vmatmul.mubr.msk.f32.vlgmr.msra.gmra.mxu1 %vm291_vm2, %v1220_v55  ;;  %v1212_v58 = vmul.f32 %v2781_v50, %v1203_v56  ;;  %3330 = vmatprep.subr.mxu0 %v3721_v4  ;;  %v2787_v55 = vld [vmem:[%s4937_s15] ss:$0 sm:$0xff] }
 0xa08   :  { %v3635_v59 = vpop.eup %3634  ;;  %3308 = vmatprep.mubr.msk.f32.mxu1 %vm3722_vm1, %v3721_v4  ;;  %3331 = vmatpush3.msra.mxu0 %v1345_v10 }
 0xa09   :  { %v1221_v60 = vadd.f32 %v2782_v51, %v1212_v58  ;;  %v1204_v61 = vmul.f32 %v3635_v59, %v1180_v18  ;;  %3332 = vmatprep.subr.mxu0 %v3721_v4  ;;  %v1339_v18 = vld [vmem:[%s4936_s14 + $0x8] sm:$0xff] }
 0xa0a   :  { %3333 = vmatpush3.msra.mxu0 %v1344_v11 }
 0xa0b   :  { %3309 = vmatmul.mubr.msk.f32.gmra.mxu1 %vm291_vm2, %v1221_v60  ;;  %v1213_v63 = vmul.f32 %v2781_v50, %v1204_v61  ;;  %3334 = vmatprep.subr.mxu0 %v3721_v4 }
 0xa0c   :  { %3311 = vmatprep.mubr.msk.f32.mxu1 %vm3722_vm1, %v3721_v4  ;;  %3335 = vmatpush3.msra.mxu0 %v1343_v12 }
 0xa0d   :  { %v1222_v0 = vadd.f32 %v2782_v51, %v1213_v63  ;;  %3336 = vmatprep.subr.mxu0 %v3721_v4 }
 0xa0e   :  { %3337 = vmatpush3.msra.mxu0 %v1342_v13 }
 0xa0f   :  { %3312 = vmatmul.mubr.msk.f32.gmra.mxu1 %vm291_vm2, %v1222_v0  ;;  %3338 = vmatprep.subr.mxu0 %v3721_v4 }
 0xa10   :  { %3363 = vmatprep.mubr.msk.f32.mxu1 %vm3722_vm1, %v3721_v4  ;;  %3339 = vmatpush3.msra.mxu0 %v1341_v17 }
 0xa11   :  { %3340 = vmatprep.subr.mxu0 %v3721_v4 }
 0xa12   :  { %3341 = vmatpush3.msra.mxu0 %v1340_v21 }
 0xa13   :  { %3342 = vmatprep.subr.mxu0 %v3721_v4 }
 0xa14   :  { %3343 = vmatpush3.msra.mxu0 %v1339_v18 }
 0xa15   :  { %3344 = vmatprep.subr.mxu0 %v3721_v4 }
 0xa16   :  { %3345 = vmatpush3.msra.mxu0 %v1338_v27 }
 0xa17   :  { %3405 = vmatprep.subr.mxu0 %v3721_v4 }
 0xac7   :  { %v1309_v29 = vpop.f32.mrf.mxu1 }
 0xac8   :  { %v1310_v31 = vadd.f32 %v2783_v28, %v1309_v29 }
 0xac9   :  { %v3307_v32 = vpop.f32.mrf.mxu1 }
 0xaca   :  { %v1326_v33 = vmul.f32 0.70710677, %v1310_v31  ;;  %v1323_v43 = vmul.f32 0.5, %v1310_v31 }
 0xacb   :  { %v1314_v34 = vpop.f32.mrf.mxu1 }
 0xacc   :  { %3636 = verf.f32 %v1326_v33  ;;  %v1315_v35 = vadd.f32 %v2783_v28, %v1314_v34 }
 0xacd   :  { %v3310_v36 = vpop.f32.mrf.mxu1 }
 0xace   :  { %v1327_v37 = vmul.f32 0.70710677, %v1315_v35  ;;  %v1324_v47 = vmul.f32 0.5, %v1315_v35 }
 0xacf   :  { %v1319_v38 = vpop.f32.mrf.mxu1 }
 0xad0   :  { %3638 = verf.f32 %v1327_v37  ;;  %v1320_v39 = vadd.f32 %v2783_v28, %v1319_v38  ;;  %v2795_v37 = vld [vmem:[%s4966_s28 + $0x38] sm:$0xff]  ;;  %v2794_v38 = vld [vmem:[%s4966_s28 + $0x30] sm:$0xff] }
 0xad1   :  { %v3313_v40 = vpop.f32.mrf.mxu1  ;;  %3356 = vmatpush3.msra.mxu1 %v2795_v37 }
 0xad2   :  { %v1328_v41 = vmul.f32 0.70710677, %v1320_v39  ;;  %v1325_v51 = vmul.f32 0.5, %v1320_v39  ;;  %3357 = vmatprep.subr.mxu1 %v3721_v4  ;;  %v2793_v39 = vld [vmem:[%s4966_s28 + $0x28] sm:$0xff]  ;;  %v2792_v40 = vld [vmem:[%s4966_s28 + $0x20] sm:$0xff] }
 0xad3   :  { %3358 = vmatpush3.msra.mxu1 %v2794_v38  ;;  %v3681_v38 = vld [vmem:[%s4941_s19 + $0x18] sm:$0xff] }
 0xad4   :  { %3640 = verf.f32 %v1328_v41  ;;  %3359 = vmatprep.subr.mxu1 %v3721_v4 }
 0xad5   :  { %3360 = vmatpush3.msra.mxu1 %v2793_v39  ;;  %v3682_v39 = vld [vmem:[%s4941_s19 + $0x20] sm:$0xff] }
 0xad6   :  { %3361 = vmatprep.subr.mxu1 %v3721_v4 }
 0xad7   :  { %3362 = vmatpush3.msra.mxu1 %v2792_v40 }
 0xad8   :  { %3372 = vmatprep.subr.mxu1 %v3721_v4 }
 0xad9   :  { %v3637_v42 = vpop.eup %3636 }
 0xada   :  { %v1332_v44 = vadd.f32 1.0, %v3637_v42 }
 0xadc   :  { %v1335_v45 = vmul.f32 %v1332_v44, %v1323_v43 }
 0xadd   :  { %v3639_v46 = vpop.eup %3638 }
 0xade   :  { %3347 = vmatmul.mubr.f32.vlgmr.msra.gmra.mxu0 %v1335_v45  ;;  %v1333_v49 = vadd.f32 1.0, %v3639_v46 }
 0xadf   :  { %3349 = vmatprep.mubr.msk.f32.mxu0 %vm3722_vm1, %v3721_v4 }
 0xae0   :  { %v1336_v50 = vmul.f32 %v1333_v49, %v1324_v47 }
 0xae1   :  { %v3641_v48 = vpop.eup %3640 }
 0xae2   :  { %3350 = vmatmul.mubr.f32.gmra.mxu0 %v1336_v50  ;;  %v1334_v53 = vadd.f32 1.0, %v3641_v48 }
 0xae3   :  { %3352 = vmatprep.mubr.msk.f32.mxu0 %vm3722_vm1, %v3721_v4 }
 0xae4   :  { %v1337_v54 = vmul.f32 %v1334_v53, %v1325_v51  ;;  %v2790_v51 = vld [vmem:[%s4967_s1 + $0x1] ss:$0 sm:$0xff] }
 0xae6   :  { %3353 = vmatmul.mubr.f32.gmra.mxu0 %v1337_v54  ;;  %v2791_v54 = vld [vmem:[%s4968_s6 + $0x1] ss:$0 sm:$0xff] }
 0xae7   :  { %3411 = vmatprep.mubr.msk.f32.mxu0 %vm3722_vm1, %v3721_v4 }
 0xb9e   :  { %v1427_v56 = vpop.f32.mrf.mxu0 }
 0xb9f   :  { %v1428_v58 = vadd.f32 %v2787_v55, %v1427_v56 }
 0xba0   :  { %v3348_v59 = vpop.f32.mrf.mxu0 }
 0xba1   :  { %v4438_v60 = vadd.f32 %v1428_v58, %v4310_v52 }
 0xba2   :  { %v1432_v61 = vpop.f32.mrf.mxu0 }
 0xba3   :  { %v1433_v63 = vadd.f32 %v2787_v55, %v1432_v61  ;;  %v1448_v0 = vsel %vm291_vm2, %v4438_v60, 0.0 }
 0xba4   :  { %1449 = vadd.xlane.f32.xlu1 %v1448_v0  ;;  %v3351_v2 = vpop.f32.mrf.mxu0 }
 0xba5   :  { %v4443_v3 = vadd.f32 %v1433_v63, %v4315_v57 }
 0xba6   :  { %v1437_v15 = vpop.f32.mrf.mxu0 }
 0xba7   :  { %v1438_v9 = vadd.f32 %v2787_v55, %v1437_v15  ;;  %v1451_v10 = vsel %vm291_vm2, %v4443_v3, 0.0 }
 0xba8   :  { %1452 = vadd.xlane.f32.xlu0 %v1451_v10  ;;  %v3354_v11 = vpop.f32.mrf.mxu0 }
 0xba9   :  { %v4448_v52 = vadd.f32 %v1438_v9, %v4320_v14 }
 0xbab   :  { %v1454_v12 = vsel %vm298_vm3, %v4448_v52, 0.0 }
 0xbac   :  { %1455 = vadd.xlane.f32.xlu1 %v1454_v12  ;;  %v2797_v12 = vld [vmem:[%s4969_s29 + $0x1] ss:$0 sm:$0xff] }
 0xc2d   :  { %v1450_v13 = vpop.xlane.xlu1 %1449 }
 0xc2e   :  { %v1457_v17 = vmul.f32 0.03125, %v1450_v13 }
 0xc30   :  { %v1460_v21 = vsub.f32 %v4438_v60, %v1457_v17 }
 0xc31   :  { %v1453_v57 = vpop.xlane.xlu0 %1452 }
 0xc32   :  { %v1458_v18 = vmul.f32 0.03125, %v1453_v57  ;;  %v1463_v27 = vmul.f32 %v1460_v21, %v1460_v21 }
 0xc34   :  { %v1461_v28 = vsub.f32 %v4443_v3, %v1458_v18  ;;  %v1466_v29 = vsel %vm291_vm2, %v1463_v27, 0.0 }
 0xc35   :  { %1467 = vadd.xlane.f32.xlu0 %v1466_v29  ;;  %v1456_v31 = vpop.xlane.xlu1 %1455 }
 0xc36   :  { %v1459_v32 = vmul.f32 0.03125, %v1456_v31  ;;  %v1464_v14 = vmul.f32 %v1461_v28, %v1461_v28 }
 0xc38   :  { %v1462_v33 = vsub.f32 %v4448_v52, %v1459_v32  ;;  %v1469_v34 = vsel %vm291_vm2, %v1464_v14, 0.0  ;;  %v3678_v14 = vld [vmem:[%s4941_s19] sm:$0xff] }
 0xc39   :  { %1470 = vadd.xlane.f32.xlu1 %v1469_v34  ;;  %v3679_v34 = vld [vmem:[%s4941_s19 + $0x8] sm:$0xff] }
 0xc3a   :  { %v1465_v35 = vmul.f32 %v1462_v33, %v1462_v33 }
 0xc3c   :  { %v1472_v36 = vsel %vm298_vm3, %v1465_v35, 0.0 }
 0xc3d   :  { %1473 = vadd.xlane.f32.xlu0 %v1472_v36  ;;  %v3680_v36 = vld [vmem:[%s4941_s19 + $0x10] sm:$0xff] }
 0xcbe   :  { %v1468_v41 = vpop.xlane.xlu0 %1467 }
 0xcbf   :  { %v1475_v42 = vmul.f32 0.03125, %v1468_v41 }
 0xcc1   :  { %v1478_v43 = vadd.f32 1e-05, %v1475_v42 }
 0xcc2   :  { %v1471_v44 = vpop.xlane.xlu1 %1470 }
 0xcc3   :  { %3642 = vrsqrt.f32 %v1478_v43  ;;  %v1476_v45 = vmul.f32 0.03125, %v1471_v44 }
 0xcc5   :  { %v1479_v46 = vadd.f32 1e-05, %v1476_v45 }
 0xcc6   :  { %v1474_v47 = vpop.xlane.xlu0 %1473 }
 0xcc7   :  { %3644 = vrsqrt.f32 %v1479_v46  ;;  %v1477_v49 = vmul.f32 0.03125, %v1474_v47 }
 0xcc9   :  { %v1480_v50 = vadd.f32 1e-05, %v1477_v49 }
 0xccb   :  { %3646 = vrsqrt.f32 %v1480_v50 }
 0xcd0   :  { %v3643_v48 = vpop.eup %3642 }
 0xcd1   :  { %v1484_v53 = vmul.f32 %v3643_v48, %v1460_v21 }
 0xcd3   :  { %v1493_v55 = vmul.f32 %v2790_v51, %v1484_v53  ;;  %v4620_v53 = vld [vmem:[%s4940_s18 + $0x40] sm:$0xff] }
 0xcd4   :  { %v3645_v56 = vpop.eup %3644 }
 0xcd5   :  { %v1502_v58 = vadd.f32 %v2791_v54, %v1493_v55  ;;  %v1485_v59 = vmul.f32 %v3645_v56, %v1461_v28  ;;  %v4628_v56 = vld [vmem:[%s4940_s18 + $0x38] sm:$0xff] }
 0xcd7   :  { %3364 = vmatmul.mubr.msk.f32.vlgmr.msra.gmra.mxu1 %vm291_vm2, %v1502_v58  ;;  %v1494_v61 = vmul.f32 %v2790_v51, %v1485_v59  ;;  %v4636_v59 = vld [vmem:[%s4940_s18 + $0x30] sm:$0xff] }
 0xcd8   :  { %v3647_v63 = vpop.eup %3646  ;;  %3366 = vmatprep.mubr.msk.f32.mxu1 %vm3722_vm1, %v3721_v4 }
 0xcd9   :  { %v1503_v0 = vadd.f32 %v2791_v54, %v1494_v61  ;;  %v1486_v2 = vmul.f32 %v3647_v63, %v1462_v33  ;;  %v4644_v63 = vld [vmem:[%s4940_s18 + $0x28] sm:$0xff] }
 0xcdb   :  { %3367 = vmatmul.mubr.msk.f32.gmra.mxu1 %vm291_vm2, %v1503_v0  ;;  %v1495_v15 = vmul.f32 %v2790_v51, %v1486_v2  ;;  %v4652_v2 = vld [vmem:[%s4940_s18 + $0x20] sm:$0xff] }
 0xcdc   :  { %3369 = vmatprep.mubr.msk.f32.mxu1 %vm3722_vm1, %v3721_v4 }
 0xcdd   :  { %v1504_v9 = vadd.f32 %v2791_v54, %v1495_v15 }
 0xcdf   :  { %3370 = vmatmul.mubr.msk.f32.gmra.mxu1 %vm291_vm2, %v1504_v9  ;;  %v4660_v9 = vld [vmem:[%s4940_s18 + $0x18] sm:$0xff] }
 0xce0   :  { %3378 = vmatprep.mubr.msk.f32.mxu1 %vm3722_vm1, %v3721_v4 }
 0xd97   :  { %v1593_v10 = vpop.f32.mrf.mxu1 }
 0xd98   :  { %v4496_v18 = vadd.f32 %v2797_v12, %v1593_v10 }
 0xd99   :  { %v3365_v11 = vpop.f32.mrf.mxu1 }
 0xd9a   :  { %v3693_v11 = vld [vmem:[%s4940_s18 + $0x10] sm:$0xff] }
 0xd9b   :  { %v1598_v13 = vpop.f32.mrf.mxu1 }
 0xd9c   :  { %v4492_v17 = vadd.f32 %v2797_v12, %v1598_v13  ;;  %v3694_v13 = vld [vmem:[%s4940_s18 + $0x8] sm:$0xff] }
 0xd9d   :  { %v3368_v21 = vpop.f32.mrf.mxu1 }
 0xd9e   :  { %1612 = vrot.lane.b32.xlu0 %v4492_v17, %s3723_s3 }
 0xd9f   :  { %v1603_v57 = vpop.f32.mrf.mxu1 }
 0xda0   :  { %v4498_v27 = vadd.f32 %v2797_v12, %v1603_v57  ;;  %v3695_v57 = vld [vmem:[%s4940_s18] sm:$0xff] }
 0xda1   :  { %v3371_v28 = vpop.f32.mrf.mxu1 }
 0xda2   :  { %1739 = vrot.lane.b32.xlu0 %v4496_v18, %s3724_s0  ;;  %1614 = vrot.lane.b32.xlu1 %v4498_v27, %s3723_s3 }
 0xda6   :  { %1610 = vrot.lane.b32.xlu1 %v4496_v18, %s3723_s3 }
 0xdaa   :  { %1741 = vrot.lane.b32.xlu1 %v4492_v17, %s3724_s0 }
 0xdae   :  { %1743 = vrot.lane.b32.xlu1 %v4498_v27, %s3724_s0 }
 0xe10   :  { %v1613_v31 = vpop.permute.xlu0 %1612 }
 0xe14   :  { %v1615_v29 = vpop.permute.xlu1 %1614  ;;  %v1740_v37 = vpop.permute.xlu0 %1739 }
 0xe15   :  { %3373 = vmatpush3.msk.msra.mxu1 %vm490_vm4, %v1615_v29 }
 0xe16   :  { %3374 = vmatprep.subr.mxu1 %v3721_v4 }
 0xe17   :  { %3375 = vmatpush3.msra.mxu1 %v1613_v31 }
 0xe18   :  { %3376 = vmatprep.subr.mxu1 %v3721_v4  ;;  %v1611_v32 = vpop.permute.xlu1 %1610 }
 0xe19   :  { %3377 = vmatpush3.msra.mxu1 %v1611_v32 }
 0xe1a   :  { %3379 = vmatmul.mubr.msk.f32.vlgmr.msra.gmra.mxu1 %vm462_vm5, %v3678_v14  ;;  %3438 = vmatprep.subr.mxu1 %v3721_v4 }
 0xe1b   :  { %3381 = vmatprep.mubr.msk.f32.mxu1 %vm3722_vm1, %v3721_v4 }
 0xe1c   :  { %v1742_v33 = vpop.permute.xlu1 %1741 }
 0xe1e   :  { %3382 = vmatmul.mubr.msk.f32.gmra.mxu1 %vm462_vm5, %v3679_v34 }
 0xe1f   :  { %3384 = vmatprep.mubr.msk.f32.mxu1 %vm3722_vm1, %v3721_v4 }
 0xe20   :  { %v1744_v35 = vpop.permute.xlu1 %1743 }
 0xe21   :  { %3406 = vmatpush3.msk.msra.mxu0 %vm490_vm4, %v1744_v35 }
 0xe22   :  { %3385 = vmatmul.mubr.msk.f32.gmra.mxu1 %vm462_vm5, %v3680_v36  ;;  %3407 = vmatprep.subr.mxu0 %v3721_v4 }
 0xe23   :  { %3408 = vmatpush3.msra.mxu0 %v1742_v33  ;;  %3387 = vmatprep.mubr.msk.f32.mxu1 %vm3722_vm1, %v3721_v4 }
 0xe24   :  { %3409 = vmatprep.subr.mxu0 %v3721_v4 }
 0xe25   :  { %3410 = vmatpush3.msra.mxu0 %v1740_v37 }
 0xe26   :  { %3388 = vmatmul.mubr.msk.f32.gmra.mxu1 %vm462_vm5, %v3681_v38  ;;  %3412 = vmatmul.mubr.msk.f32.vlgmr.msra.gmra.mxu0 %vm462_vm5, %v3678_v14 }
 0xe27   :  { %3390 = vmatprep.mubr.msk.f32.mxu1 %vm3722_vm1, %v3721_v4  ;;  %3414 = vmatprep.mubr.msk.f32.mxu0 %vm3722_vm1, %v3721_v4 }
 0xe28   :  { %3465 = vmatprep.subr.mxu0 %v3721_v4 }
 0xe29   :  { %3466 = vmatpush3.msra.mxu0 %v4143_v5  ;;  %v3683_v5 = vld [vmem:[%s4941_s19 + $0x28] sm:$0xff] }
 0xe2a   :  { %3391 = vmatmul.mubr.msk.f32.gmra.mxu1 %vm462_vm5, %v3682_v39  ;;  %3415 = vmatmul.mubr.msk.f32.gmra.mxu0 %vm462_vm5, %v3679_v34 }
 0xe2b   :  { %3393 = vmatprep.mubr.msk.f32.mxu1 %vm3722_vm1, %v3721_v4  ;;  %3417 = vmatprep.mubr.msk.f32.mxu0 %vm3722_vm1, %v3721_v4 }
 0xe2c   :  { %3467 = vmatprep.subr.mxu0 %v3721_v4 }
 0xe2d   :  { %3468 = vmatpush3.msra.mxu0 %v4148_v6  ;;  %v3684_v6 = vld [vmem:[%s4941_s19 + $0x30] sm:$0xff] }
 0xe2e   :  { %3394 = vmatmul.mubr.msk.f32.gmra.mxu1 %vm462_vm5, %v3683_v5  ;;  %3418 = vmatmul.mubr.msk.f32.gmra.mxu0 %vm462_vm5, %v3680_v36 }
 0xe2f   :  { %3396 = vmatprep.mubr.msk.f32.mxu1 %vm3722_vm1, %v3721_v4  ;;  %3420 = vmatprep.mubr.msk.f32.mxu0 %vm3722_vm1, %v3721_v4 }
 0xe30   :  { %3469 = vmatprep.subr.mxu0 %v3721_v4 }
 0xe31   :  { %3470 = vmatpush3.msra.mxu0 %v4155_v7  ;;  %v3685_v7 = vld [vmem:[%s4941_s19 + $0x38] sm:$0xff] }
 0xe32   :  { %3397 = vmatmul.mubr.msk.f32.gmra.mxu1 %vm462_vm5, %v3684_v6  ;;  %3421 = vmatmul.mubr.msk.f32.gmra.mxu0 %vm462_vm5, %v3681_v38 }
 0xe33   :  { %3399 = vmatprep.mubr.msk.f32.mxu1 %vm3722_vm1, %v3721_v4  ;;  %3423 = vmatprep.mubr.msk.f32.mxu0 %vm3722_vm1, %v3721_v4 }
 0xe34   :  { %3471 = vmatprep.subr.mxu0 %v3721_v4 }
 0xe35   :  { %3472 = vmatpush3.msra.mxu0 %v4176_v19  ;;  %v3686_v19 = vld [vmem:[%s4941_s19 + $0x40] sm:$0xff] }
 0xe36   :  { %3400 = vmatmul.mubr.msk.f32.gmra.mxu1 %vm462_vm5, %v3685_v7  ;;  %3424 = vmatmul.mubr.msk.f32.gmra.mxu0 %vm462_vm5, %v3682_v39 }
 0xe37   :  { %3402 = vmatprep.mubr.msk.f32.mxu1 %vm3722_vm1, %v3721_v4  ;;  %3426 = vmatprep.mubr.msk.f32.mxu0 %vm3722_vm1, %v3721_v4 }
 0xe38   :  { %3473 = vmatprep.subr.mxu0 %v3721_v4 }
 0xe39   :  { %3474 = vmatpush3.msra.mxu0 %v4183_v20 }
 0xe3a   :  { %3403 = vmatmul.mubr.msk.f32.gmra.mxu1 %vm462_vm5, %v3686_v19  ;;  %3427 = vmatmul.mubr.msk.f32.gmra.mxu0 %vm462_vm5, %v3683_v5 }
 0xe3b   :  { %3456 = vmatprep.mubr.msk.f32.mxu1 %vm3722_vm1, %v3721_v4  ;;  %3429 = vmatprep.mubr.msk.f32.mxu0 %vm3722_vm1, %v3721_v4 }
 0xe3c   :  { %3475 = vmatprep.subr.mxu0 %v3721_v4 }
 0xe3d   :  { %3476 = vmatpush3.msra.mxu0 %v4190_v22 }
 0xe3e   :  { %3430 = vmatmul.mubr.msk.f32.gmra.mxu0 %vm462_vm5, %v3684_v6  ;;  %3477 = vmatprep.subr.mxu0 %v3721_v4 }
 0xe3f   :  { %3432 = vmatprep.mubr.msk.f32.mxu0 %vm3722_vm1, %v3721_v4  ;;  %3478 = vmatpush3.msra.mxu0 %v4197_v23 }
 0xe40   :  { %3479 = vmatprep.subr.mxu0 %v3721_v4 }
 0xe41   :  { %3480 = vmatpush3.msra.mxu0 %v4204_v24 }
 0xe42   :  { %3433 = vmatmul.mubr.msk.f32.gmra.mxu0 %vm462_vm5, %v3685_v7  ;;  %3481 = vmatprep.subr.mxu0 %v3721_v4 }
 0xe43   :  { %3435 = vmatprep.mubr.msk.f32.mxu0 %vm3722_vm1, %v3721_v4  ;;  %3482 = vmatpush3.msra.mxu0 %v4211_v25 }
 0xe44   :  { %3519 = vmatprep.subr.mxu0 %v3721_v4 }
 0xe46   :  { %3436 = vmatmul.mubr.msk.f32.gmra.mxu0 %vm462_vm5, %v3686_v19 }
 0xe47   :  { %3483 = vmatprep.mubr.msk.f32.mxu0 %vm3722_vm1, %v3721_v4 }
 0xeda   :  { %v1686_v20 = vpop.f32.mrf.mxu1 }
 0xedb   :  { %v1730_v28 = vmul.f32 %v3695_v57, %v1686_v20 }
 0xedc   :  { %v3380_v22 = vpop.f32.mrf.mxu1 }
 0xede   :  { %v1691_v23 = vpop.f32.mrf.mxu1 }
 0xedf   :  { %v1731_v21 = vmul.f32 %v3694_v13, %v1691_v23 }
 0xee0   :  { %v3383_v24 = vpop.f32.mrf.mxu1 }
 0xee2   :  { %v1696_v40 = vpop.f32.mrf.mxu1 }
 0xee3   :  { %v1732_v12 = vmul.f32 %v3693_v11, %v1696_v40 }
 0xee4   :  { %v3386_v41 = vpop.f32.mrf.mxu1 }
 0xee6   :  { %v1701_v42 = vpop.f32.mrf.mxu1  ;;  %v1815_v36 = vpop.f32.mrf.mxu0 }
 0xee7   :  { %v1733_v10 = vmul.f32 %v4660_v9, %v1701_v42 }
 0xee8   :  { %v3389_v43 = vpop.f32.mrf.mxu1 }
 0xeea   :  { %v1706_v44 = vpop.f32.mrf.mxu1 }
 0xeeb   :  { %v1734_v15 = vmul.f32 %v4652_v2, %v1706_v44 }
 0xeec   :  { %v3392_v45 = vpop.f32.mrf.mxu1 }
 0xeee   :  { %v1711_v46 = vpop.f32.mrf.mxu1 }
 0xeef   :  { %v1735_v0 = vmul.f32 %v4644_v63, %v1711_v46 }
 0xef0   :  { %v3395_v47 = vpop.f32.mrf.mxu1 }
 0xef2   :  { %v1716_v25 = vpop.f32.mrf.mxu1 }
 0xef3   :  { %v1736_v61 = vmul.f32 %v4636_v59, %v1716_v25 }
 0xef4   :  { %v3398_v49 = vpop.f32.mrf.mxu1 }
 0xef6   :  { %v1721_v50 = vpop.f32.mrf.mxu1 }
 0xef7   :  { %v1737_v58 = vmul.f32 %v4628_v56, %v1721_v50 }
 0xef8   :  { %v3401_v48 = vpop.f32.mrf.mxu1 }
 0xefa   :  { %v1726_v51 = vpop.f32.mrf.mxu1 }
 0xefb   :  { %v1738_v54 = vmul.f32 %v4620_v53, %v1726_v51 }
 0xefc   :  { %v3404_v55 = vpop.f32.mrf.mxu1 }
 0xefd   :  { %3439 = vmatpush3.xpose.msk.msra.mxu1 %vm291_vm2, %v1738_v54 }
 0xefe   :  { %3440 = vmatprep.subr.mxu1 %v3721_v4 }
 0xf01   :  { %3441 = vmatpush3.xpose.msk.msra.mxu1 %vm291_vm2, %v1737_v58 }
 0xf02   :  { %3442 = vmatprep.subr.mxu1 %v3721_v4 }
 0xf05   :  { %3443 = vmatpush3.xpose.msk.msra.mxu1 %vm291_vm2, %v1736_v61 }
 0xf06   :  { %3444 = vmatprep.subr.mxu1 %v3721_v4 }
 0xf09   :  { %3445 = vmatpush3.xpose.msk.msra.mxu1 %vm291_vm2, %v1735_v0 }
 0xf0a   :  { %3446 = vmatprep.subr.mxu1 %v3721_v4 }
 0xf0d   :  { %3447 = vmatpush3.xpose.msk.msra.mxu1 %vm291_vm2, %v1734_v15 }
 0xf0e   :  { %3448 = vmatprep.subr.mxu1 %v3721_v4 }
 0xf11   :  { %3449 = vmatpush3.xpose.msk.msra.mxu1 %vm291_vm2, %v1733_v10 }
 0xf12   :  { %3450 = vmatprep.subr.mxu1 %v3721_v4 }
 0xf15   :  { %3451 = vmatpush3.xpose.msk.msra.mxu1 %vm291_vm2, %v1732_v12  ;;  %v3697_v12 = vld [vmem:[%s4942_s20 + $0x8] sm:$0xff] }
 0xf16   :  { %3452 = vmatprep.subr.mxu1 %v3721_v4 }
 0xf19   :  { %3453 = vmatpush3.xpose.msk.msra.mxu1 %vm291_vm2, %v1731_v21 }
 0xf1a   :  { %3454 = vmatprep.subr.mxu1 %v3721_v4 }
 0xf1d   :  { %3455 = vmatpush3.xpose.msk.msra.mxu1 %vm291_vm2, %v1730_v28 }
 0xf1e   :  { %3492 = vmatprep.subr.mxu1 %v3721_v4 }
 0xf20   :  { %3457 = vmatmul.mubr.msk.f32.vlgmr.msra.gmra.mxu1 %vm291_vm2, %v4496_v18 }
 0xf21   :  { %3459 = vmatprep.mubr.msk.f32.mxu1 %vm3722_vm1, %v3721_v4 }
 0xf24   :  { %3460 = vmatmul.mubr.msk.f32.gmra.mxu1 %vm291_vm2, %v4492_v17 }
 0xf25   :  { %3462 = vmatprep.mubr.msk.f32.mxu1 %vm3722_vm1, %v3721_v4 }
 0xf28   :  { %3463 = vmatmul.mubr.msk.f32.gmra.mxu1 %vm291_vm2, %v4498_v27  ;;  %v3413_v27 = vpop.f32.mrf.mxu0 }
 0xf29   :  { %3510 = vmatprep.mubr.msk.f32.mxu1 %vm3722_vm1, %v3721_v4 }
 0xf2a   :  { %v1820_v37 = vpop.f32.mrf.mxu0 }
 0xf2b   :  { %v1860_v51 = vmul.f32 %v3694_v13, %v1820_v37 }
 0xf2c   :  { %v3416_v38 = vpop.f32.mrf.mxu0 }
 0xf2e   :  { %v1825_v39 = vpop.f32.mrf.mxu0 }
 0xf2f   :  { %v1861_v48 = vmul.f32 %v3693_v11, %v1825_v39 }
 0xf30   :  { %v3419_v5 = vpop.f32.mrf.mxu0 }
 0xf32   :  { %v1830_v6 = vpop.f32.mrf.mxu0 }
 0xf33   :  { %v1862_v50 = vmul.f32 %v4660_v9, %v1830_v6  ;;  %v3696_v9 = vld [vmem:[%s4942_s20] sm:$0xff] }
 0xf34   :  { %v3422_v7 = vpop.f32.mrf.mxu0 }
 0xf36   :  { %v1835_v19 = vpop.f32.mrf.mxu0 }
 0xf37   :  { %v1863_v49 = vmul.f32 %v4652_v2, %v1835_v19 }
 0xf38   :  { %v3425_v20 = vpop.f32.mrf.mxu0 }
 0xf3a   :  { %v1840_v22 = vpop.f32.mrf.mxu0 }
 0xf3b   :  { %v1864_v25 = vmul.f32 %v4644_v63, %v1840_v22  ;;  %v2844_v22 = vld [vmem:[%s4931_s9 + $0x1] ss:$0 sm:$0xff] }
 0xf3c   :  { %v3428_v23 = vpop.f32.mrf.mxu0 }
 0xf3e   :  { %v1845_v24 = vpop.f32.mrf.mxu0 }
 0xf3f   :  { %v1865_v47 = vmul.f32 %v4636_v59, %v1845_v24 }
 0xf40   :  { %v3431_v40 = vpop.f32.mrf.mxu0 }
 0xf42   :  { %v1850_v41 = vpop.f32.mrf.mxu0 }
 0xf43   :  { %v1866_v44 = vmul.f32 %v4628_v56, %v1850_v41 }
 0xf44   :  { %v3434_v42 = vpop.f32.mrf.mxu0 }
 0xf46   :  { %v1855_v43 = vpop.f32.mrf.mxu0 }
 0xf47   :  { %v1867_v45 = vmul.f32 %v4620_v53, %v1855_v43  ;;  %v1859_v53 = vmul.f32 %v3695_v57, %v1815_v36  ;;  %v3698_v57 = vld [vmem:[%s4942_s20 + $0x10] sm:$0x3] }
 0xf48   :  { %v3437_v46 = vpop.f32.mrf.mxu0 }
 0xf49   :  { %3493 = vmatpush3.msra.mxu1 %v1867_v45 }
 0xf4a   :  { %3494 = vmatprep.subr.mxu1 %v3721_v4 }
 0xf4b   :  { %3495 = vmatpush3.msra.mxu1 %v1866_v44 }
 0xf4c   :  { %3496 = vmatprep.subr.mxu1 %v3721_v4 }
 0xf4d   :  { %3497 = vmatpush3.msra.mxu1 %v1865_v47 }
 0xf4e   :  { %3498 = vmatprep.subr.mxu1 %v3721_v4 }
 0xf4f   :  { %3499 = vmatpush3.msra.mxu1 %v1864_v25 }
 0xf50   :  { %3500 = vmatprep.subr.mxu1 %v3721_v4 }
 0xf51   :  { %3501 = vmatpush3.msra.mxu1 %v1863_v49 }
 0xf52   :  { %3502 = vmatprep.subr.mxu1 %v3721_v4 }
 0xf53   :  { %3503 = vmatpush3.msra.mxu1 %v1862_v50 }
 0xf54   :  { %3504 = vmatprep.subr.mxu1 %v3721_v4 }
 0xf55   :  { %3505 = vmatpush3.msra.mxu1 %v1861_v48 }
 0xf56   :  { %3506 = vmatprep.subr.mxu1 %v3721_v4 }
 0xf57   :  { %3507 = vmatpush3.msra.mxu1 %v1860_v51 }
 0xf58   :  { %3508 = vmatprep.subr.mxu1 %v3721_v4 }
 0xf59   :  { %3509 = vmatpush3.msra.mxu1 %v1859_v53 }
 0xf5a   :  { %3536 = vmatprep.subr.mxu1 %v3721_v4 }
 0xfe0   :  { %v1967_v29 = vpop.f32.mrf.mxu1 }
 0xfe1   :  { %v1981_v31 = vsel %vm854_vm6, %v1967_v29, -inf }
 0xfe2   :  { %1982 = vmax.xlane.f32.xlu1 %v1981_v31  ;;  %v3458_v18 = vpop.f32.mrf.mxu1  ;;  %v2841_v31 = vld [vmem:[%s4930_s8 + $0x30] sm:$0xff] }
 0xfe3   :  { %v2840_v18 = vld [vmem:[%s4930_s8 + $0x28] sm:$0xff] }
 0xfe4   :  { %v1972_v32 = vpop.f32.mrf.mxu1 }
 0xfe5   :  { %v1984_v14 = vsel %vm854_vm6, %v1972_v32, -inf }
 0xfe6   :  { %1985 = vmax.xlane.f32.xlu0 %v1984_v14  ;;  %v3461_v33 = vpop.f32.mrf.mxu1 }
 0xfe8   :  { %v1977_v17 = vpop.f32.mrf.mxu1 }
 0xfe9   :  { %v1987_v34 = vsel %vm861_vm7, %v1977_v17, -inf }
 0xfea   :  { %1988 = vmax.xlane.f32.xlu0 %v1987_v34  ;;  %v3464_v35 = vpop.f32.mrf.mxu1 }
0x106b   :  { %v1983_v54 = vpop.xlane.xlu1 %1982 }
0x106c   :  { %v1990_v55 = vsub.f32 %v1967_v29, %v1983_v54  ;;  %v2842_v29 = vld [vmem:[%s4930_s8 + $0x38] sm:$0xff] }
0x106e   :  { %v1993_v56 = vmul.f32 1.442695, %v1990_v55 }
0x106f   :  { %v1986_v58 = vpop.xlane.xlu0 %1985 }
0x1070   :  { %3648 = vpow2.f32 %v1993_v56  ;;  %v1991_v59 = vsub.f32 %v1972_v32, %v1986_v58 }
0x1072   :  { %v1995_v61 = vmul.f32 1.442695, %v1991_v59 }
0x1073   :  { %v1989_v63 = vpop.xlane.xlu0 %1988 }
0x1074   :  { %3650 = vpow2.f32 %v1995_v61  ;;  %v1992_v0 = vsub.f32 %v1977_v17, %v1989_v63 }
0x1076   :  { %v1997_v2 = vmul.f32 1.442695, %v1992_v0 }
0x1078   :  { %3652 = vpow2.f32 %v1997_v2 }
0x107d   :  { %v3649_v15 = vpop.eup %3648 }
0x107e   :  { %v1999_v10 = vmul.f32 %v3696_v9, %v3649_v15 }
0x1080   :  { %3484 = vmatmul.mubr.msk.f32.vlgmr.msra.gmra.mxu0 %vm854_vm6, %v1999_v10 }
0x1081   :  { %v3651_v11 = vpop.eup %3650  ;;  %3486 = vmatprep.mubr.msk.f32.mxu0 %vm3722_vm1, %v3721_v4  ;;  %3520 = vmatpush3.msra.mxu0 %v2842_v29  ;;  %v2873_v29 = vld [vmem:[%s4936_s14 + $0xe0] sm:$0xff] }
0x1082   :  { %v2000_v13 = vmul.f32 %v3697_v12, %v3651_v11  ;;  %3521 = vmatprep.subr.mxu0 %v3721_v4  ;;  %v2854_v11 = vld [vmem:[%s4934_s12 + $0x30] sm:$0xff]  ;;  %v2853_v12 = vld [vmem:[%s4934_s12 + $0x28] sm:$0xff] }
0x1083   :  { %3522 = vmatpush3.msra.mxu0 %v2841_v31 }
0x1084   :  { %3487 = vmatmul.mubr.msk.f32.gmra.mxu0 %vm854_vm6, %v2000_v13  ;;  %3523 = vmatprep.subr.mxu0 %v3721_v4 }
0x1085   :  { %v3653_v21 = vpop.eup %3652  ;;  %3489 = vmatprep.mubr.msk.f32.mxu0 %vm3722_vm1, %v3721_v4  ;;  %3524 = vmatpush3.msra.mxu0 %v2840_v18 }
0x1086   :  { %v2001_v28 = vmul.f32 %v3698_v57, %v3653_v21  ;;  %3525 = vmatprep.subr.mxu0 %v3721_v4  ;;  %v2876_v21 = vld [vmem:[%s4936_s14 + $0xf8] sm:$0xff]  ;;  %v2875_v57 = vld [vmem:[%s4936_s14 + $0xf0] sm:$0xff] }
0x1087   :  { %3526 = vmatpush3.msra.mxu0 %v2839_v8 }
0x1088   :  { %3490 = vmatmul.mubr.msk.f32.gmra.mxu0 %vm854_vm6, %v2001_v28  ;;  %3553 = vmatprep.subr.mxu0 %v3721_v4 }
0x1089   :  { %3527 = vmatprep.mubr.msk.f32.mxu0 %vm3722_vm1, %v3721_v4 }
0x1140   :  { %v2077_v32 = vpop.f32.mrf.mxu0 }
0x1141   :  { %v2078_v14 = vadd.f32 %v2077_v32, %v277_v16 }
0x1142   :  { %v3485_v33 = vpop.f32.mrf.mxu0 }
0x1143   :  { %3654 = vrcp.f32 %v2078_v14 }
0x1144   :  { %v2082_v17 = vpop.f32.mrf.mxu0 }
0x1145   :  { %v2083_v34 = vadd.f32 %v2082_v17, %v278_v26 }
0x1146   :  { %v3488_v35 = vpop.f32.mrf.mxu0 }
0x1147   :  { %3656 = vrcp.f32 %v2083_v34 }
0x1148   :  { %v2087_v36 = vpop.f32.mrf.mxu0 }
0x1149   :  { %v2088_v27 = vadd.f32 %v2087_v36, %v279_v30 }
0x114a   :  { %v3491_v37 = vpop.f32.mrf.mxu0 }
0x114b   :  { %3658 = vrcp.f32 %v2088_v27  ;;  %v2850_v37 = vld [vmem:[%s4932_s10 + $0x1] ss:$0 sm:$0xff] }
0x1150   :  { %v3655_v38 = vpop.eup %3654 }
0x1151   :  { %v2094_v39 = vmul.f32 %v3655_v38, %v1999_v10  ;;  %v2855_v10 = vld [vmem:[%s4934_s12 + $0x38] sm:$0xff] }
0x1153   :  { %3511 = vmatmul.mubr.msk.f32.vlgmr.msra.gmra.mxu1 %vm854_vm6, %v2094_v39  ;;  %v2851_v39 = vld [vmem:[%s4933_s11 + $0x1] ss:$0 sm:$0xff] }
0x1154   :  { %v3657_v62 = vpop.eup %3656  ;;  %3513 = vmatprep.mubr.msk.f32.mxu1 %vm3722_vm1, %v3721_v4  ;;  %3537 = vmatpush3.msra.mxu1 %v2855_v10 }
0x1155   :  { %v2095_v16 = vmul.f32 %v3657_v62, %v2000_v13  ;;  %3538 = vmatprep.subr.mxu1 %v3721_v4  ;;  %v2852_v13 = vld [vmem:[%s4934_s12 + $0x20] sm:$0xff] }
0x1156   :  { %3539 = vmatpush3.msra.mxu1 %v2854_v11 }
0x1157   :  { %3514 = vmatmul.mubr.msk.f32.gmra.mxu1 %vm854_vm6, %v2095_v16  ;;  %3540 = vmatprep.subr.mxu1 %v3721_v4 }
0x1158   :  { %v3659_v1 = vpop.eup %3658  ;;  %3516 = vmatprep.mubr.msk.f32.mxu1 %vm3722_vm1, %v3721_v4  ;;  %3541 = vmatpush3.msra.mxu1 %v2853_v12 }
0x1159   :  { %v2096_v26 = vmul.f32 %v3659_v1, %v2001_v28  ;;  %3542 = vmatprep.subr.mxu1 %v3721_v4  ;;  %v2874_v28 = vld [vmem:[%s4936_s14 + $0xe8] sm:$0xff] }
0x115a   :  { %3543 = vmatpush3.msra.mxu1 %v2852_v13 }
0x115b   :  { %3517 = vmatmul.mubr.msk.f32.gmra.mxu1 %vm854_vm6, %v2096_v26  ;;  %3594 = vmatprep.subr.mxu1 %v3721_v4 }
0x115c   :  { %3544 = vmatprep.mubr.msk.f32.mxu1 %vm3722_vm1, %v3721_v4 }
0x1213   :  { %v2172_v30 = vpop.f32.mrf.mxu1 }
0x1214   :  { %3528 = vmatmul.mubr.msk.f32.vlgmr.msra.gmra.mxu0 %vm291_vm2, %v2172_v30 }
0x1215   :  { %v3512_v5 = vpop.f32.mrf.mxu1  ;;  %3530 = vmatprep.mubr.msk.f32.mxu0 %vm3722_vm1, %v3721_v4  ;;  %3554 = vmatpush3.msra.mxu0 %v2876_v21 }
0x1216   :  { %3555 = vmatprep.subr.mxu0 %v3721_v4 }
0x1217   :  { %v2177_v6 = vpop.f32.mrf.mxu1  ;;  %3556 = vmatpush3.msra.mxu0 %v2875_v57 }
0x1218   :  { %3531 = vmatmul.mubr.msk.f32.gmra.mxu0 %vm291_vm2, %v2177_v6  ;;  %3557 = vmatprep.subr.mxu0 %v3721_v4 }
0x1219   :  { %v3515_v7 = vpop.f32.mrf.mxu1  ;;  %3533 = vmatprep.mubr.msk.f32.mxu0 %vm3722_vm1, %v3721_v4  ;;  %3558 = vmatpush3.msra.mxu0 %v2874_v28 }
0x121a   :  { %3559 = vmatprep.subr.mxu0 %v3721_v4 }
0x121b   :  { %v2182_v19 = vpop.f32.mrf.mxu1  ;;  %3560 = vmatpush3.msra.mxu0 %v2873_v29 }
0x121c   :  { %3534 = vmatmul.mubr.msk.f32.gmra.mxu0 %vm291_vm2, %v2182_v19  ;;  %3561 = vmatprep.subr.mxu0 %v3721_v4 }
0x121d   :  { %v3518_v20 = vpop.f32.mrf.mxu1  ;;  %3585 = vmatprep.mubr.msk.f32.mxu0 %vm3722_vm1, %v3721_v4 }
0x121e   :  { %v2872_v20 = vld [vmem:[%s4936_s14 + $0xd8] sm:$0xff] }
0x121f   :  { %3562 = vmatpush3.msra.mxu0 %v2872_v20 }
0x1220   :  { %3563 = vmatprep.subr.mxu0 %v3721_v4 }
0x12d4   :  { %v2274_v23 = vpop.f32.mrf.mxu0 }
0x12d5   :  { %v2275_v24 = vadd.f32 %v2844_v22, %v2274_v23  ;;  %v2870_v23 = vld [vmem:[%s4936_s14 + $0xc8] sm:$0xff] }
0x12d6   :  { %v3529_v40 = vpop.f32.mrf.mxu0 }
0x12d7   :  { %v4772_v41 = vadd.f32 %v2275_v24, %v4438_v60  ;;  %v2869_v24 = vld [vmem:[%s4936_s14 + $0xc0] sm:$0xff]  ;;  %v2868_v40 = vld [vmem:[%s4936_s14 + $0xb8] sm:$0xff] }
0x12d8   :  { %v2279_v42 = vpop.f32.mrf.mxu0 }
0x12d9   :  { %v2280_v43 = vadd.f32 %v2844_v22, %v2279_v42  ;;  %v2295_v44 = vsel %vm291_vm2, %v4772_v41, 0.0  ;;  %v2867_v42 = vld [vmem:[%s4936_s14 + $0xb0] sm:$0xff] }
0x12da   :  { %2296 = vadd.xlane.f32.xlu0 %v2295_v44  ;;  %v3532_v45 = vpop.f32.mrf.mxu0  ;;  %v2865_v44 = vld [vmem:[%s4936_s14 + $0xa0] sm:$0xff] }
0x12db   :  { %v4777_v46 = vadd.f32 %v2280_v43, %v4443_v3  ;;  %v2866_v43 = vld [vmem:[%s4936_s14 + $0xa8] sm:$0xff]  ;;  %v2864_v45 = vld [vmem:[%s4936_s14 + $0x98] sm:$0xff] }
0x12dc   :  { %v2284_v47 = vpop.f32.mrf.mxu0 }
0x12dd   :  { %v2285_v25 = vadd.f32 %v2844_v22, %v2284_v47  ;;  %v2298_v49 = vsel %vm291_vm2, %v4777_v46, 0.0  ;;  %v2871_v22 = vld [vmem:[%s4936_s14 + $0xd0] sm:$0xff] }
0x12de   :  { %2299 = vadd.xlane.f32.xlu1 %v2298_v49  ;;  %v3535_v50 = vpop.f32.mrf.mxu0  ;;  %3564 = vmatpush3.msra.mxu0 %v2871_v22  ;;  %v2863_v47 = vld [vmem:[%s4936_s14 + $0x90] sm:$0xff]  ;;  %v2861_v49 = vld [vmem:[%s4936_s14 + $0x80] sm:$0xff] }
0x12df   :  { %v4782_v60 = vadd.f32 %v2285_v25, %v4448_v52  ;;  %3565 = vmatprep.subr.mxu0 %v3721_v4  ;;  %v2862_v25 = vld [vmem:[%s4936_s14 + $0x88] sm:$0xff]  ;;  %v2857_v50 = vld [vmem:[%s4935_s13 + $0x1] ss:$0 sm:$0xff] }
0x12e0   :  { %3566 = vmatpush3.msra.mxu0 %v2870_v23 }
0x12e1   :  { %v2301_v48 = vsel %vm298_vm3, %v4782_v60, 0.0  ;;  %3567 = vmatprep.subr.mxu0 %v3721_v4 }
0x12e2   :  { %2302 = vadd.xlane.f32.xlu0 %v2301_v48  ;;  %3568 = vmatpush3.msra.mxu0 %v2869_v24 }
0x12e3   :  { %3569 = vmatprep.subr.mxu0 %v3721_v4 }
0x12e4   :  { %3570 = vmatpush3.msra.mxu0 %v2868_v40 }
0x12e5   :  { %3571 = vmatprep.subr.mxu0 %v3721_v4 }
0x12e6   :  { %3572 = vmatpush3.msra.mxu0 %v2867_v42 }
0x12e7   :  { %3573 = vmatprep.subr.mxu0 %v3721_v4 }
0x12e8   :  { %3574 = vmatpush3.msra.mxu0 %v2866_v43 }
0x12e9   :  { %3575 = vmatprep.subr.mxu0 %v3721_v4 }
0x12ea   :  { %3576 = vmatpush3.msra.mxu0 %v2865_v44 }
0x12eb   :  { %3577 = vmatprep.subr.mxu0 %v3721_v4 }
0x12ec   :  { %3578 = vmatpush3.msra.mxu0 %v2864_v45 }
0x12ed   :  { %3579 = vmatprep.subr.mxu0 %v3721_v4 }
0x12ee   :  { %3580 = vmatpush3.msra.mxu0 %v2863_v47 }
0x12ef   :  { %3581 = vmatprep.subr.mxu0 %v3721_v4 }
0x12f0   :  { %3582 = vmatpush3.msra.mxu0 %v2862_v25 }
0x12f1   :  { %3583 = vmatprep.subr.mxu0 %v3721_v4 }
0x12f2   :  { %3584 = vmatpush3.msra.mxu0 %v2861_v49 }
0x1363   :  { %v2297_v51 = vpop.xlane.xlu0 %2296 }
0x1364   :  { %v2304_v53 = vmul.f32 0.03125, %v2297_v51 }
0x1366   :  { %v2307_v54 = vsub.f32 %v4772_v41, %v2304_v53 }
0x1367   :  { %v2300_v3 = vpop.xlane.xlu1 %2299 }
0x1368   :  { %v2305_v55 = vmul.f32 0.03125, %v2300_v3  ;;  %v2310_v56 = vmul.f32 %v2307_v54, %v2307_v54 }
0x136a   :  { %v2308_v58 = vsub.f32 %v4777_v46, %v2305_v55  ;;  %v2313_v59 = vsel %vm291_vm2, %v2310_v56, 0.0 }
0x136b   :  { %2314 = vadd.xlane.f32.xlu1 %v2313_v59  ;;  %v2303_v61 = vpop.xlane.xlu0 %2302 }
0x136c   :  { %v2306_v63 = vmul.f32 0.03125, %v2303_v61  ;;  %v2311_v52 = vmul.f32 %v2308_v58, %v2308_v58 }
0x136e   :  { %v2309_v0 = vsub.f32 %v4782_v60, %v2306_v63  ;;  %v2316_v2 = vsel %vm291_vm2, %v2311_v52, 0.0 }
0x136f   :  { %2317 = vadd.xlane.f32.xlu0 %v2316_v2 }
0x1370   :  { %v2312_v15 = vmul.f32 %v2309_v0, %v2309_v0 }
0x1372   :  { %v2319_v9 = vsel %vm298_vm3, %v2312_v15, 0.0 }
0x1373   :  { %2320 = vadd.xlane.f32.xlu1 %v2319_v9 }
0x13f4   :  { %v2315_v31 = vpop.xlane.xlu1 %2314 }
0x13f5   :  { %v2322_v18 = vmul.f32 0.03125, %v2315_v31 }
0x13f7   :  { %v2325_v32 = vadd.f32 1e-05, %v2322_v18 }
0x13f8   :  { %v2318_v14 = vpop.xlane.xlu0 %2317 }
0x13f9   :  { %3660 = vrsqrt.f32 %v2325_v32  ;;  %v2323_v33 = vmul.f32 0.03125, %v2318_v14  ;;  %v2878_v32 = vld [vmem:[%s4937_s15 + $0x1] ss:$0 sm:$0xff] }
0x13fb   :  { %v2326_v17 = vadd.f32 1e-05, %v2323_v33 }
0x13fc   :  { %v2321_v34 = vpop.xlane.xlu1 %2320 }
0x13fd   :  { %3662 = vrsqrt.f32 %v2326_v17  ;;  %v2324_v35 = vmul.f32 0.03125, %v2321_v34 }
0x13ff   :  { %v2327_v36 = vadd.f32 1e-05, %v2324_v35 }
0x1401   :  { %3664 = vrsqrt.f32 %v2327_v36 }
0x1406   :  { %v3661_v27 = vpop.eup %3660 }
0x1407   :  { %v2331_v38 = vmul.f32 %v3661_v27, %v2307_v54 }
0x1409   :  { %v2340_v62 = vmul.f32 %v2850_v37, %v2331_v38 }
0x140a   :  { %v3663_v16 = vpop.eup %3662 }
0x140b   :  { %v2349_v1 = vadd.f32 %v2851_v39, %v2340_v62  ;;  %v2332_v26 = vmul.f32 %v3663_v16, %v2308_v58 }
0x140d   :  { %3545 = vmatmul.mubr.msk.f32.vlgmr.msra.gmra.mxu1 %vm291_vm2, %v2349_v1  ;;  %v2341_v8 = vmul.f32 %v2850_v37, %v2332_v26 }
0x140e   :  { %v3665_v30 = vpop.eup %3664  ;;  %3547 = vmatprep.mubr.msk.f32.mxu1 %vm3722_vm1, %v3721_v4 }
0x140f   :  { %v2350_v5 = vadd.f32 %v2851_v39, %v2341_v8  ;;  %v2333_v6 = vmul.f32 %v3665_v30, %v2309_v0 }
0x1411   :  { %3548 = vmatmul.mubr.msk.f32.gmra.mxu1 %vm291_vm2, %v2350_v5  ;;  %v2342_v7 = vmul.f32 %v2850_v37, %v2333_v6 }
0x1412   :  { %3550 = vmatprep.mubr.msk.f32.mxu1 %vm3722_vm1, %v3721_v4 }
0x1413   :  { %v2351_v19 = vadd.f32 %v2851_v39, %v2342_v7 }
0x1415   :  { %3551 = vmatmul.mubr.msk.f32.gmra.mxu1 %vm291_vm2, %v2351_v19 }
0x1416   :  { %3600 = vmatprep.mubr.msk.f32.mxu1 %vm3722_vm1, %v3721_v4 }
0x14cd   :  { %v2440_v48 = vpop.f32.mrf.mxu1 }
0x14ce   :  { %v2441_v51 = vadd.f32 %v2857_v50, %v2440_v48 }
0x14cf   :  { %v3546_v53 = vpop.f32.mrf.mxu1 }
0x14d0   :  { %v2457_v54 = vmul.f32 0.70710677, %v2441_v51  ;;  %v2454_v2 = vmul.f32 0.5, %v2441_v51 }
0x14d1   :  { %v2445_v3 = vpop.f32.mrf.mxu1 }
0x14d2   :  { %3666 = verf.f32 %v2457_v54  ;;  %v2446_v55 = vadd.f32 %v2857_v50, %v2445_v3  ;;  %v2879_v3 = vld [vmem:[%s4938_s16] ss:$0 sm:$0xff] }
0x14d3   :  { %v3549_v56 = vpop.f32.mrf.mxu1 }
0x14d4   :  { %v2458_v58 = vmul.f32 0.70710677, %v2446_v55  ;;  %v2455_v11 = vmul.f32 0.5, %v2446_v55 }
0x14d5   :  { %v2450_v59 = vpop.f32.mrf.mxu1 }
0x14d6   :  { %3668 = verf.f32 %v2458_v58  ;;  %v2451_v61 = vadd.f32 %v2857_v50, %v2450_v59 }
0x14d7   :  { %v3552_v63 = vpop.f32.mrf.mxu1 }
0x14d8   :  { %v2459_v52 = vmul.f32 0.70710677, %v2451_v61  ;;  %v2456_v57 = vmul.f32 0.5, %v2451_v61  ;;  %v2880_v61 = vld [vmem:[%s4939_s17] ss:$0 sm:$0xff]  ;;  %s3725_s17 = smov [#allocation2]  }
0x14d9   :  { %s2720_s29 = sshll.u32 %s3725_s17, 4  ;;  %s2721_s29 = int_to_ptr.vmem [resolvable:$true] %s2720_s29 }
0x14da   :  { %3670 = verf.f32 %v2459_v52  ;;  %s3699_s5 = scalar_lea.vmem %s2721_s29, 32  ;;  %p3704_p1 = scmp.lt.s32.totalorder %s2721_s29, %s2721_s29 }
0x14db   :  { %p3700_p0 = scmp.ne.s32.totalorder %s2721_s29, %s3699_s5  ;;  %p3705_p2 = scmp.lt.s32.totalorder %s3699_s5, %s3699_s5 }
0x14dd   :  { %p3706_p3 = por %p3705_p2, %p3704_p1 }
0x14df   :  { %v3667_v0 = vpop.eup %3666  ;;  %p3707_p4 = pnand %p3706_p3, %p3700_p0 }
0x14e0   :  { %v2463_v15 = vadd.f32 1.0, %v3667_v0 }
0x14e2   :  { %v2466_v9 = vmul.f32 %v2463_v15, %v2454_v2 }
0x14e3   :  { %v3669_v10 = vpop.eup %3668 }
0x14e4   :  { %3586 = vmatmul.mubr.f32.vlgmr.msra.gmra.mxu0 %v2466_v9  ;;  %v2464_v12 = vadd.f32 1.0, %v3669_v10  ;;  %v2636_v9 = vld [vmem:[%s4944_s22] sm:$0x3] }
0x14e5   :  { %3588 = vmatprep.mubr.msk.f32.mxu0 %vm3722_vm1, %v3721_v4 }
0x14e6   :  { %v2467_v13 = vmul.f32 %v2464_v12, %v2455_v11 }
0x14e7   :  { %v3671_v21 = vpop.eup %3670 }
0x14e8   :  { %3589 = vmatmul.mubr.f32.gmra.mxu0 %v2467_v13  ;;  %v2465_v28 = vadd.f32 1.0, %v3671_v21 }
0x14e9   :  { %3591 = vmatprep.mubr.msk.f32.mxu0 %vm3722_vm1, %v3721_v4 }
0x14ea   :  { %v2468_v29 = vmul.f32 %v2465_v28, %v2456_v57 }
0x14ec   :  { %3592 = vmatmul.mubr.f32.gmra.mxu0 %v2468_v29 }
0x15a4   :  { %v2560_v31 = vpop.f32.mrf.mxu0 }
0x15a5   :  { %v2561_v36 = vadd.f32 %v2878_v32, %v2560_v31 }
0x15a6   :  { %v3587_v18 = vpop.f32.mrf.mxu0 }
0x15a7   :  { %v2574_v16 = vadd.f32 %v2561_v36, %v4772_v41 }
0x15a8   :  { %v2565_v14 = vpop.f32.mrf.mxu0 }
0x15a9   :  { %v2566_v33 = vadd.f32 %v2878_v32, %v2565_v14  ;;  %v2579_v1 = vsel %vm291_vm2, %v2574_v16, 0.0 }
0x15aa   :  { %v3590_v17 = vpop.f32.mrf.mxu0 }
0x15ab   :  { %v2575_v34 = vadd.f32 %v2566_v33, %v4777_v46 }
0x15ac   :  { %v2570_v35 = vpop.f32.mrf.mxu0 }
0x15ad   :  { %v2571_v27 = vadd.f32 %v2878_v32, %v2570_v35  ;;  %v2582_v37 = vsel %vm291_vm2, %v2575_v34, 0.0 }
0x15ae   :  { %2583 = vadd.xlane.f32.xlu1 %v2582_v37  ;;  %v3593_v38 = vpop.f32.mrf.mxu0 }
0x15af   :  { %v2576_v39 = vadd.f32 %v2571_v27, %v4782_v60 }
0x15b1   :  { %v2585_v62 = vsel %vm298_vm3, %v2576_v39, 0.0 }
0x15b2   :  { %2586 = vadd.xlane.f32.xlu0 %v2585_v62 }
0x15b6   :  { %2580 = vadd.xlane.f32.xlu0 %v2579_v1 }
0x1637   :  { %v2584_v26 = vpop.xlane.xlu1 %2583 }
0x1638   :  { %v2589_v8 = vmul.f32 0.03125, %v2584_v26 }
0x163a   :  { %v2592_v46 = vsub.f32 %v2575_v34, %v2589_v8 }
0x163b   :  { %v2587_v30 = vpop.xlane.xlu0 %2586 }
0x163c   :  { %v2590_v5 = vmul.f32 0.03125, %v2587_v30  ;;  %v2595_v6 = vmul.f32 %v2592_v46, %v2592_v46 }
0x163e   :  { %v2593_v7 = vsub.f32 %v2576_v39, %v2590_v5  ;;  %v2600_v19 = vsel %vm291_vm2, %v2595_v6, 0.0 }
0x163f   :  { %2601 = vadd.xlane.f32.xlu0 %v2600_v19  ;;  %v2581_v20 = vpop.xlane.xlu0 %2580 }
0x1640   :  { %v2588_v60 = vmul.f32 0.03125, %v2581_v20  ;;  %v2596_v22 = vmul.f32 %v2593_v7, %v2593_v7 }
0x1642   :  { %v2591_v23 = vsub.f32 %v2574_v16, %v2588_v60  ;;  %v2603_v41 = vsel %vm298_vm3, %v2596_v22, 0.0 }
0x1643   :  { %2604 = vadd.xlane.f32.xlu1 %v2603_v41 }
0x1644   :  { %v2594_v24 = vmul.f32 %v2591_v23, %v2591_v23 }
0x1646   :  { %v2597_v40 = vsel %vm291_vm2, %v2594_v24, 0.0 }
0x1647   :  { %2598 = vadd.xlane.f32.xlu1 %v2597_v40 }
0x16c8   :  { %v2602_v42 = vpop.xlane.xlu0 %2601 }
0x16c9   :  { %v2607_v43 = vmul.f32 0.03125, %v2602_v42 }
0x16cb   :  { %v2610_v44 = vadd.f32 1e-05, %v2607_v43 }
0x16cc   :  { %v2605_v45 = vpop.xlane.xlu1 %2604 }
0x16cd   :  { %3672 = vrsqrt.f32 %v2610_v44  ;;  %v2608_v47 = vmul.f32 0.03125, %v2605_v45 }
0x16cf   :  { %v2611_v25 = vadd.f32 1e-05, %v2608_v47 }
0x16d0   :  { %v2599_v49 = vpop.xlane.xlu1 %2598 }
0x16d1   :  { %3674 = vrsqrt.f32 %v2611_v25  ;;  %v2606_v50 = vmul.f32 0.03125, %v2599_v49 }
0x16d3   :  { %v2609_v48 = vadd.f32 1e-05, %v2606_v50 }
0x16d5   :  { %3676 = vrsqrt.f32 %v2609_v48 }
0x16da   :  { %v3673_v51 = vpop.eup %3672 }
0x16db   :  { %v2616_v53 = vmul.f32 %v3673_v51, %v2592_v46 }
0x16dd   :  { %v2625_v58 = vmul.f32 %v2879_v3, %v2616_v53 }
0x16de   :  { %v3675_v54 = vpop.eup %3674 }
0x16df   :  { %v2617_v55 = vmul.f32 %v3675_v54, %v2593_v7  ;;  %v2634_v0 = vadd.f32 %v2880_v61, %v2625_v58 }
0x16e1   :  { %v2626_v56 = vmul.f32 %v2879_v3, %v2617_v55 }
0x16e2   :  { %v3677_v59 = vpop.eup %3676 }
0x16e3   :  { %v2635_v63 = vadd.f32 %v2880_v61, %v2626_v56  ;;  %v2615_v52 = vmul.f32 %v3677_v59, %v2591_v23 }
0x16e5   :  { %3595 = vmatpush3.msk.msra.mxu1 %vm490_vm4, %v2635_v63  ;;  %v2624_v2 = vmul.f32 %v2879_v3, %v2615_v52 }
0x16e6   :  { %3596 = vmatprep.subr.mxu1 %v3721_v4 }
0x16e7   :  { %3597 = vmatpush3.msra.mxu1 %v2634_v0  ;;  %v2633_v15 = vadd.f32 %v2880_v61, %v2624_v2 }
0x16e8   :  { %3598 = vmatprep.subr.mxu1 %v3721_v4 }
0x16e9   :  { %3599 = vmatpush3.msra.mxu1 %v2633_v15 }
0x16ea   :  { %3601 = vmatmul.mubr.msk.f32.vlgmr.msra.gmra.mxu1 %vm462_vm5, %v2636_v9 }
0x17aa   :  { %v2709_v10 = vpop.f32.mrf.mxu1 }
0x17ab   :  { %2713 = vst.msk [vmem:[#allocation2] sm:$0x3] %vm298_vm3, %v2709_v10 }
0x17ac   :  { %v3602_v11 = vpop.f32.mrf.mxu1 }
0x17ad   :  { %3710 = shalt.err (!%p3707_p4)
}
0x17ae   :  { %2723 = dma.vmem_to_hbm [thread:$0]  %s2721_s29, 32, %s4945_s23, [#allocation3]  }
0x17af   :  { %3719 = dma.done.wait [#allocation3], 32  }
0x17b0   :  { %3720 = vsyncadd [#allocation3], 4294967264 }
0x17b1   :  { %2727 = vsyncpa [#allocation3], 1 }

</bundles_post_ra>
